<compile_context>
chip_gen: v5e
topology: v5e:2x2
jax: 0.10.0
libtpu: 0.0.40
codegen_flags: <defaults>
</compile_context>

<pallas_src>
import math

import jax
import jax.numpy as jnp
from jax.experimental import pallas as pl
from jax.experimental.pallas import tpu as pltpu

# ---- hyperparameters (consistent with IJEPA.__init__) -----------------------
BOARD = 4                       # board_size
T = BOARD * BOARD               # tokens per encoder = 16
D = T * 12                      # input feature dim = 192
E = 32                          # embed_dim
H = 4                           # num_heads (folded away: seq len == 1)
FF = 4 * E                      # dim_feedforward = 128
ENC_LAYERS = 2
PRED_LAYERS = 1
NUM_LAYERS = 2 * ENC_LAYERS + PRED_LAYERS   # 5 stacked layers
LN_EPS = 1e-5                   # nn.TransformerEncoderLayer default
INV_E = 1.0 / E


# =============================== fused Pallas kernel ==========================

def _layer_norm(x, g, b):
    # var = E[x^2] - mu^2: two *independent* lane reductions (overlap on XLU),
    # scaled by a precomputed 1/E.  Biased variance, like torch LayerNorm.
    s1 = jnp.sum(x, axis=-1, keepdims=True)
    s2 = jnp.sum(x * x, axis=-1, keepdims=True)
    mu = s1 * INV_E
    var = s2 * INV_E - mu * mu
    return (x - mu) * jax.lax.rsqrt(var + LN_EPS) * g + b


def _make_ijepa_kernel(k_targets):
    """Fused forward kernel for a static number of target tokens K (== T)."""
    assert k_targets == T, "torch loss broadcast requires K == board_size**2"

    def kernel(x_ref, cmask_ref, tmask_ref,
               be_w_ref, be_b_ref, enc_pos_ref, pred_pos_ref,
               wattn_ref, battn_ref,
               w1_ref, b1_ref, w2_ref, b2_ref,
               g1_ref, c1_ref, g2_ref, c2_ref,
               loss_ref):

        def layer(tok, l):
            # tok: (R, E) -- R independent tokens, attention sequence length 1.
            # Folded attention: softmax over one key == 1, so MHA output is
            # exactly tok @ (Wv^T Wo^T) + (bv Wo^T + bo)  -> one bf16 matmul.
            attn = (jnp.dot(tok.astype(jnp.bfloat16), wattn_ref[l],
                            preferred_element_type=jnp.float32)
                    + battn_ref[l:l + 1, :])
            h1 = _layer_norm(tok + attn, g1_ref[l:l + 1, :], c1_ref[l:l + 1, :])
            ff = jnp.maximum(
                jnp.dot(h1.astype(jnp.bfloat16), w1_ref[l],
                        preferred_element_type=jnp.float32)
                + b1_ref[l:l + 1, :], 0.0)
            ff = (jnp.dot(ff.astype(jnp.bfloat16), w2_ref[l],
                          preferred_element_type=jnp.float32)
                  + b2_ref[l:l + 1, :])
            return _layer_norm(h1 + ff, g2_ref[l:l + 1, :], c2_ref[l:l + 1, :])

        def encoder(board, e_idx, layer_base):
            # board: (1, D).  ViTEncoder: Linear -> +pos_embed -> transformer.
            emb = (jnp.dot(board.astype(jnp.bfloat16), be_w_ref[e_idx],
                           preferred_element_type=jnp.float32)
                   + be_b_ref[e_idx:e_idx + 1, :])                # (1, E)
            tok = enc_pos_ref[e_idx] + emb                        # (T, E)
            for li in range(ENC_LAYERS):                          # unrolled
                tok = layer(tok, layer_base + li)
            return tok                                            # (T, E)

        x = x_ref[0]                                              # (1, D)
        cm = cmask_ref[0]                                         # (1, D)
        tm = tmask_ref[0]                                         # (1, D)

        # context_board = x * context_mask.flatten()
        ctx_reps = encoder(x * cm, 0, 0)                          # (T, E)
        # target_boards = (x.unsqueeze(1) * target_masks.view(1,-1,D)).view(-1,D)
        # torch runs the target encoder under no_grad()/eval() -- same numerics.
        tgt_reps = encoder(x * tm, 1, ENC_LAYERS)                 # (T, E)

        # predictor: cat([context_reps, pos_embed.expand(1, K, E)], dim=1)
        pos = jnp.broadcast_to(pred_pos_ref[...], (k_targets, E))
        tok = jnp.concatenate([ctx_reps, pos], axis=0)            # (T + K, E)
        for li in range(PRED_LAYERS):
            tok = layer(tok, 2 * ENC_LAYERS + li)
        pred = tok[T:, :]                                         # (K, E)

        # loss = mean((pred_reps - target_reps)**2), K == T so shapes align.
        diff = pred - tgt_reps
        sq = diff * diff
        tot = jnp.sum(jnp.sum(sq, axis=1, keepdims=True), axis=0, keepdims=True)
        loss_ref[0] = tot * (1.0 / float(T * E))

    return kernel


def _resident_spec(shape):
    # Full-array block whose index never changes with the grid step: the weight
    # is DMA'd once and stays VMEM-resident across all boards.
    nd = len(shape)
    return pl.BlockSpec(shape, lambda b: (0,) * nd)


def ijepa_forward(params, x, context_mask, target_masks, k_targets):
    """Batched forward: each board = one torch IJEPA.forward call (B = 1).

    x:            (NB, D) float
    context_mask: (NB, BOARD, BOARD, 12)
    target_masks: (NB, T, 12)
    Returns (NB,) per-board MSE losses.
    """
    assert k_targets == T, "torch loss broadcast requires K == board_size**2"
    nb = x.shape[0]
    x3 = x.reshape(nb, 1, D).astype(jnp.float32)
    cm = context_mask.reshape(nb, 1, D).astype(jnp.float32)
    tm = target_masks.reshape(nb, 1, D).astype(jnp.float32)

    per_board = pl.BlockSpec((1, 1, D), lambda b: (b, 0, 0))

    weights = (params["be_w"], params["be_b"], params["enc_pos"], params["pred_pos"],
               params["w_attn"], params["b_attn"],
               params["w1"], params["b1"], params["w2"], params["b2"],
               params["g1"], params["c1"], params["g2"], params["c2"])

    out = pl.pallas_call(
        _make_ijepa_kernel(k_targets),
        out_shape=jax.ShapeDtypeStruct((nb, 1, 1), jnp.float32),
        grid_spec=pltpu.PrefetchScalarGridSpec(
            num_scalar_prefetch=0,
            grid=(nb,),
            in_specs=[per_board, per_board, per_board]
                     + [_resident_spec(w.shape) for w in weights],
            out_specs=pl.BlockSpec((1, 1, 1), lambda b: (b, 0, 0)),
        ),
        compiler_params=pltpu.CompilerParams(
            dimension_semantics=("parallel",)),
    )(x3, cm, tm, *weights)
    return out[:, 0, 0]


# ============================ parameter initialization ========================

def _init_linear(key, din, dout):
    bnd = 1.0 / math.sqrt(din)
    kw, kb = jax.random.split(key)
    w = jax.random.uniform(kw, (dout, din), jnp.float32, -bnd, bnd)
    b = jax.random.uniform(kb, (dout,), jnp.float32, -bnd, bnd)
    return w, b


def _init_layer(key):
    k = jax.random.split(key, 4)
    in_w, in_b = _init_linear(k[0], E, 3 * E)       # in_proj (3E, E), (3E,)
    wo, bo = _init_linear(k[1], E, E)
    w1, b1 = _init_linear(k[2], E, FF)
    w2, b2 = _init_linear(k[3], FF, E)
    # Fold V-projection with the output projection (seq length == 1):
    #   attn = x @ (Wv^T Wo^T) + (bv Wo^T + bo)
    wv_t = in_w[2 * E:, :].T                        # (E, E)
    wo_t = wo.T                                     # (E, E)
    w_attn = wv_t @ wo_t                            # fused (E, E), f32
    b_attn = in_b[2 * E:] @ wo_t + bo               # fused (E,)
    return dict(
        w_attn=w_attn, b_attn=b_attn,
        w1=w1.T, b1=b1, w2=w2.T, b2=b2,
        g1=jnp.ones((E,), jnp.float32), c1=jnp.zeros((E,), jnp.float32),
        g2=jnp.ones((E,), jnp.float32), c2=jnp.zeros((E,), jnp.float32),
    )


def init_params(key):
    keys = jax.random.split(key, 2 + NUM_LAYERS)
    # board_embed for (context encoder, target encoder)
    be = [_init_linear(keys[i], D, E) for i in range(2)]
    # layer order: ctx[0], ctx[1], tgt[0], tgt[1], pred[0]
    layers = [_init_layer(keys[2 + i]) for i in range(NUM_LAYERS)]
    stack = lambda name: jnp.stack([lyr[name] for lyr in layers], axis=0)
    return dict(
        # matmul weights pre-cast to bf16 (f32 MXU accumulation in-kernel);
        # biases / LN params / pos-embeds stay f32 for the VPU path.
        be_w=jnp.stack([be[0][0].T, be[1][0].T]).astype(jnp.bfloat16),  # (2, D, E)
        be_b=jnp.stack([be[0][1], be[1][1]]),                          # (2, E)
        enc_pos=jnp.zeros((2, T, E), jnp.float32),                     # torch.zeros init
        pred_pos=jnp.zeros((1, E), jnp.float32),                       # torch.zeros init
        w_attn=stack("w_attn").astype(jnp.bfloat16),                   # (5, E, E)
        b_attn=stack("b_attn"),                                        # (5, E)
        w1=stack("w1").astype(jnp.bfloat16), b1=stack("b1"),           # (5, E, FF)
        w2=stack("w2").astype(jnp.bfloat16), b2=stack("b2"),           # (5, FF, E)
        g1=stack("g1"), c1=stack("c1"),
        g2=stack("g2"), c2=stack("c2"),
    )


# ===================================== main ===================================

if __name__ == "__main__":
    root = jax.random.PRNGKey(0)
    k_p, k_x, k_cm = jax.random.split(root, 3)

    params = init_params(k_p)

    NB = 8  # independent board positions; each grid step == one torch forward
    x = jax.random.normal(k_x, (NB, D), jnp.float32)                     # (8, 192)
    context_mask = (jax.random.uniform(k_cm, (NB, BOARD, BOARD, 12)) > 0.5
                    ).astype(jnp.float32)
    # target mask with exactly T nonzeros per board (plane 0 of every square)
    # so that K == T, matching the broadcast in the torch loss.
    target_masks = jnp.zeros((NB, T, 12), jnp.float32).at[:, :, 0].set(1.0)
    # TODO(synk): K comes from torch.nonzero(target_masks) (data dependent);
    # here it is a static Python int derived from the concrete mask.
    k_targets = int(jnp.count_nonzero(target_masks[0]))                  # == 16

    losses = ijepa_forward(params, x, context_mask, target_masks, k_targets)
    jax.block_until_ready(losses)
    print("KERNEL_OK")
</pallas_src>

<mosaic_0001>
module attributes {stable_mosaic.version = 11 : i64} {
  func.func @kernel(%arg0: i32, %arg1: memref<1x1x192xf32, #tpu.memory_space<vmem>>, %arg2: memref<1x1x192xf32, #tpu.memory_space<vmem>>, %arg3: memref<1x1x192xf32, #tpu.memory_space<vmem>>, %arg4: memref<2x192x32xbf16, #tpu.memory_space<vmem>>, %arg5: memref<2x32xf32, #tpu.memory_space<vmem>>, %arg6: memref<2x16x32xf32, #tpu.memory_space<vmem>>, %arg7: memref<1x32xf32, #tpu.memory_space<vmem>>, %arg8: memref<5x32x32xbf16, #tpu.memory_space<vmem>>, %arg9: memref<5x32xf32, #tpu.memory_space<vmem>>, %arg10: memref<5x32x128xbf16, #tpu.memory_space<vmem>>, %arg11: memref<5x128xf32, #tpu.memory_space<vmem>>, %arg12: memref<5x128x32xbf16, #tpu.memory_space<vmem>>, %arg13: memref<5x32xf32, #tpu.memory_space<vmem>>, %arg14: memref<5x32xf32, #tpu.memory_space<vmem>>, %arg15: memref<5x32xf32, #tpu.memory_space<vmem>>, %arg16: memref<5x32xf32, #tpu.memory_space<vmem>>, %arg17: memref<5x32xf32, #tpu.memory_space<vmem>>, %arg18: memref<1x1x1xf32, #tpu.memory_space<vmem>>) attributes {dimension_semantics = [#tpu.dimension_semantics<parallel>], iteration_bounds = array<i64: 8>, scalar_prefetch = 0 : i64, scratch_operands = 0 : i64, tpu.core_type = #tpu.core_type<tc>, window_params = [{transform_indices = @transform_0, window_bounds = array<i64: 1, 1, 192>}, {transform_indices = @transform_1, window_bounds = array<i64: 1, 1, 192>}, {transform_indices = @transform_2, window_bounds = array<i64: 1, 1, 192>}, {pipeline_mode = #tpu.pipeline_mode<synchronous>, transform_indices = @transform_3, window_bounds = array<i64: 2, 192, 32>}, {pipeline_mode = #tpu.pipeline_mode<synchronous>, transform_indices = @transform_4, window_bounds = array<i64: 2, 32>}, {pipeline_mode = #tpu.pipeline_mode<synchronous>, transform_indices = @transform_5, window_bounds = array<i64: 2, 16, 32>}, {pipeline_mode = #tpu.pipeline_mode<synchronous>, transform_indices = @transform_6, window_bounds = array<i64: 1, 32>}, {pipeline_mode = #tpu.pipeline_mode<synchronous>, transform_indices = @transform_7, window_bounds = array<i64: 5, 32, 32>}, {pipeline_mode = #tpu.pipeline_mode<synchronous>, transform_indices = @transform_8, window_bounds = array<i64: 5, 32>}, {pipeline_mode = #tpu.pipeline_mode<synchronous>, transform_indices = @transform_9, window_bounds = array<i64: 5, 32, 128>}, {pipeline_mode = #tpu.pipeline_mode<synchronous>, transform_indices = @transform_10, window_bounds = array<i64: 5, 128>}, {pipeline_mode = #tpu.pipeline_mode<synchronous>, transform_indices = @transform_11, window_bounds = array<i64: 5, 128, 32>}, {pipeline_mode = #tpu.pipeline_mode<synchronous>, transform_indices = @transform_12, window_bounds = array<i64: 5, 32>}, {pipeline_mode = #tpu.pipeline_mode<synchronous>, transform_indices = @transform_13, window_bounds = array<i64: 5, 32>}, {pipeline_mode = #tpu.pipeline_mode<synchronous>, transform_indices = @transform_14, window_bounds = array<i64: 5, 32>}, {pipeline_mode = #tpu.pipeline_mode<synchronous>, transform_indices = @transform_15, window_bounds = array<i64: 5, 32>}, {pipeline_mode = #tpu.pipeline_mode<synchronous>, transform_indices = @transform_16, window_bounds = array<i64: 5, 32>}, {transform_indices = @transform_17, window_bounds = array<i64: 1, 1, 1>}]} {
    %c0 = arith.constant 0 : index
    %c0_0 = arith.constant 0 : index
    %c0_1 = arith.constant 0 : index
    %0 = vector.load %arg1[%c0, %c0_0, %c0_1] : memref<1x1x192xf32, #tpu.memory_space<vmem>>, vector<1x1x192xf32>
    %1 = vector.shape_cast %0 : vector<1x1x192xf32> to vector<1x192xf32>
    %c0_2 = arith.constant 0 : index
    %c0_3 = arith.constant 0 : index
    %c0_4 = arith.constant 0 : index
    %2 = vector.load %arg2[%c0_2, %c0_3, %c0_4] : memref<1x1x192xf32, #tpu.memory_space<vmem>>, vector<1x1x192xf32>
    %3 = vector.shape_cast %2 : vector<1x1x192xf32> to vector<1x192xf32>
    %c0_5 = arith.constant 0 : index
    %c0_6 = arith.constant 0 : index
    %c0_7 = arith.constant 0 : index
    %4 = vector.load %arg3[%c0_5, %c0_6, %c0_7] : memref<1x1x192xf32, #tpu.memory_space<vmem>>, vector<1x1x192xf32>
    %5 = vector.shape_cast %4 : vector<1x1x192xf32> to vector<1x192xf32>
    %6 = arith.mulf %1, %3 : vector<1x192xf32>
    %7 = arith.truncf %6 : vector<1x192xf32> to vector<1x192xbf16>
    %c0_8 = arith.constant 0 : index
    %c0_9 = arith.constant 0 : index
    %c0_10 = arith.constant 0 : index
    %8 = vector.load %arg4[%c0_8, %c0_9, %c0_10] : memref<2x192x32xbf16, #tpu.memory_space<vmem>>, vector<1x192x32xbf16>
    %9 = vector.shape_cast %8 : vector<1x192x32xbf16> to vector<192x32xbf16>
    %cst = arith.constant dense<0.000000e+00> : vector<1x32xf32>
    %10 = tpu.matmul %7, %9, %cst {dimension_numbers = #tpu.dot_dimension_numbers<[1], [0], [0], [1], [0, 0, 1, 1], [], []>} : vector<1x192xbf16>, vector<192x32xbf16>, vector<1x32xf32> -> vector<1x32xf32>
    %c0_11 = arith.constant 0 : index
    %c0_12 = arith.constant 0 : index
    %11 = vector.load %arg5[%c0_11, %c0_12] : memref<2x32xf32, #tpu.memory_space<vmem>>, vector<1x32xf32>
    %12 = arith.addf %10, %11 : vector<1x32xf32>
    %c0_13 = arith.constant 0 : index
    %c0_14 = arith.constant 0 : index
    %c0_15 = arith.constant 0 : index
    %13 = vector.load %arg6[%c0_13, %c0_14, %c0_15] : memref<2x16x32xf32, #tpu.memory_space<vmem>>, vector<1x16x32xf32>
    %14 = vector.shape_cast %13 : vector<1x16x32xf32> to vector<16x32xf32>
    %15 = vector.broadcast %12 : vector<1x32xf32> to vector<16x32xf32>
    %16 = arith.addf %14, %15 : vector<16x32xf32>
    %17 = arith.truncf %16 : vector<16x32xf32> to vector<16x32xbf16>
    %c0_16 = arith.constant 0 : index
    %c0_17 = arith.constant 0 : index
    %c0_18 = arith.constant 0 : index
    %18 = vector.load %arg8[%c0_16, %c0_17, %c0_18] : memref<5x32x32xbf16, #tpu.memory_space<vmem>>, vector<1x32x32xbf16>
    %19 = vector.shape_cast %18 : vector<1x32x32xbf16> to vector<32x32xbf16>
    %cst_19 = arith.constant dense<0.000000e+00> : vector<16x32xf32>
    %20 = tpu.matmul %17, %19, %cst_19 {dimension_numbers = #tpu.dot_dimension_numbers<[1], [0], [0], [1], [0, 0, 1, 1], [], []>} : vector<16x32xbf16>, vector<32x32xbf16>, vector<16x32xf32> -> vector<16x32xf32>
    %c0_20 = arith.constant 0 : index
    %c0_21 = arith.constant 0 : index
    %21 = vector.load %arg9[%c0_20, %c0_21] : memref<5x32xf32, #tpu.memory_space<vmem>>, vector<1x32xf32>
    %22 = vector.broadcast %21 : vector<1x32xf32> to vector<16x32xf32>
    %23 = arith.addf %20, %22 : vector<16x32xf32>
    %24 = arith.addf %16, %23 : vector<16x32xf32>
    %c0_22 = arith.constant 0 : index
    %c0_23 = arith.constant 0 : index
    %25 = vector.load %arg14[%c0_22, %c0_23] : memref<5x32xf32, #tpu.memory_space<vmem>>, vector<1x32xf32>
    %c0_24 = arith.constant 0 : index
    %c0_25 = arith.constant 0 : index
    %26 = vector.load %arg15[%c0_24, %c0_25] : memref<5x32xf32, #tpu.memory_space<vmem>>, vector<1x32xf32>
    %cst_26 = arith.constant dense<0.000000e+00> : vector<16xf32>
    %27 = vector.multi_reduction <add>, %24, %cst_26 [1] : vector<16x32xf32> to vector<16xf32>
    %28 = vector.shape_cast %27 : vector<16xf32> to vector<16x1xf32>
    %29 = arith.mulf %24, %24 : vector<16x32xf32>
    %cst_27 = arith.constant dense<0.000000e+00> : vector<16xf32>
    %30 = vector.multi_reduction <add>, %29, %cst_27 [1] : vector<16x32xf32> to vector<16xf32>
    %31 = vector.shape_cast %30 : vector<16xf32> to vector<16x1xf32>
    %cst_28 = arith.constant 3.125000e-02 : f32
    %32 = vector.broadcast %cst_28 : f32 to vector<16x1xf32>
    %33 = arith.mulf %28, %32 : vector<16x1xf32>
    %cst_29 = arith.constant 3.125000e-02 : f32
    %34 = vector.broadcast %cst_29 : f32 to vector<16x1xf32>
    %35 = arith.mulf %31, %34 : vector<16x1xf32>
    %36 = arith.mulf %33, %33 : vector<16x1xf32>
    %37 = arith.subf %35, %36 : vector<16x1xf32>
    %38 = vector.broadcast %33 : vector<16x1xf32> to vector<16x32xf32>
    %39 = arith.subf %24, %38 : vector<16x32xf32>
    %cst_30 = arith.constant 9.99999974E-6 : f32
    %40 = vector.broadcast %cst_30 : f32 to vector<16x1xf32>
    %41 = arith.addf %37, %40 : vector<16x1xf32>
    %42 = math.rsqrt %41 : vector<16x1xf32>
    %43 = vector.broadcast %42 : vector<16x1xf32> to vector<16x32xf32>
    %44 = arith.mulf %39, %43 : vector<16x32xf32>
    %45 = vector.broadcast %25 : vector<1x32xf32> to vector<16x32xf32>
    %46 = arith.mulf %44, %45 : vector<16x32xf32>
    %47 = vector.broadcast %26 : vector<1x32xf32> to vector<16x32xf32>
    %48 = arith.addf %46, %47 : vector<16x32xf32>
    %49 = arith.truncf %48 : vector<16x32xf32> to vector<16x32xbf16>
    %c0_31 = arith.constant 0 : index
    %c0_32 = arith.constant 0 : index
    %c0_33 = arith.constant 0 : index
    %50 = vector.load %arg10[%c0_31, %c0_32, %c0_33] : memref<5x32x128xbf16, #tpu.memory_space<vmem>>, vector<1x32x128xbf16>
    %51 = vector.shape_cast %50 : vector<1x32x128xbf16> to vector<32x128xbf16>
    %cst_34 = arith.constant dense<0.000000e+00> : vector<16x128xf32>
    %52 = tpu.matmul %49, %51, %cst_34 {dimension_numbers = #tpu.dot_dimension_numbers<[1], [0], [0], [1], [0, 0, 1, 1], [], []>} : vector<16x32xbf16>, vector<32x128xbf16>, vector<16x128xf32> -> vector<16x128xf32>
    %c0_35 = arith.constant 0 : index
    %c0_36 = arith.constant 0 : index
    %53 = vector.load %arg11[%c0_35, %c0_36] : memref<5x128xf32, #tpu.memory_space<vmem>>, vector<1x128xf32>
    %54 = vector.broadcast %53 : vector<1x128xf32> to vector<16x128xf32>
    %55 = arith.addf %52, %54 : vector<16x128xf32>
    %cst_37 = arith.constant 0.000000e+00 : f32
    %56 = vector.broadcast %cst_37 : f32 to vector<16x128xf32>
    %57 = arith.maximumf %55, %56 : vector<16x128xf32>
    %58 = arith.truncf %57 : vector<16x128xf32> to vector<16x128xbf16>
    %c0_38 = arith.constant 0 : index
    %c0_39 = arith.constant 0 : index
    %c0_40 = arith.constant 0 : index
    %59 = vector.load %arg12[%c0_38, %c0_39, %c0_40] : memref<5x128x32xbf16, #tpu.memory_space<vmem>>, vector<1x128x32xbf16>
    %60 = vector.shape_cast %59 : vector<1x128x32xbf16> to vector<128x32xbf16>
    %cst_41 = arith.constant dense<0.000000e+00> : vector<16x32xf32>
    %61 = tpu.matmul %58, %60, %cst_41 {dimension_numbers = #tpu.dot_dimension_numbers<[1], [0], [0], [1], [0, 0, 1, 1], [], []>} : vector<16x128xbf16>, vector<128x32xbf16>, vector<16x32xf32> -> vector<16x32xf32>
    %c0_42 = arith.constant 0 : index
    %c0_43 = arith.constant 0 : index
    %62 = vector.load %arg13[%c0_42, %c0_43] : memref<5x32xf32, #tpu.memory_space<vmem>>, vector<1x32xf32>
    %63 = vector.broadcast %62 : vector<1x32xf32> to vector<16x32xf32>
    %64 = arith.addf %61, %63 : vector<16x32xf32>
    %65 = arith.addf %48, %64 : vector<16x32xf32>
    %c0_44 = arith.constant 0 : index
    %c0_45 = arith.constant 0 : index
    %66 = vector.load %arg16[%c0_44, %c0_45] : memref<5x32xf32, #tpu.memory_space<vmem>>, vector<1x32xf32>
    %c0_46 = arith.constant 0 : index
    %c0_47 = arith.constant 0 : index
    %67 = vector.load %arg17[%c0_46, %c0_47] : memref<5x32xf32, #tpu.memory_space<vmem>>, vector<1x32xf32>
    %cst_48 = arith.constant dense<0.000000e+00> : vector<16xf32>
    %68 = vector.multi_reduction <add>, %65, %cst_48 [1] : vector<16x32xf32> to vector<16xf32>
    %69 = vector.shape_cast %68 : vector<16xf32> to vector<16x1xf32>
    %70 = arith.mulf %65, %65 : vector<16x32xf32>
    %cst_49 = arith.constant dense<0.000000e+00> : vector<16xf32>
    %71 = vector.multi_reduction <add>, %70, %cst_49 [1] : vector<16x32xf32> to vector<16xf32>
    %72 = vector.shape_cast %71 : vector<16xf32> to vector<16x1xf32>
    %cst_50 = arith.constant 3.125000e-02 : f32
    %73 = vector.broadcast %cst_50 : f32 to vector<16x1xf32>
    %74 = arith.mulf %69, %73 : vector<16x1xf32>
    %cst_51 = arith.constant 3.125000e-02 : f32
    %75 = vector.broadcast %cst_51 : f32 to vector<16x1xf32>
    %76 = arith.mulf %72, %75 : vector<16x1xf32>
    %77 = arith.mulf %74, %74 : vector<16x1xf32>
    %78 = arith.subf %76, %77 : vector<16x1xf32>
    %79 = vector.broadcast %74 : vector<16x1xf32> to vector<16x32xf32>
    %80 = arith.subf %65, %79 : vector<16x32xf32>
    %cst_52 = arith.constant 9.99999974E-6 : f32
    %81 = vector.broadcast %cst_52 : f32 to vector<16x1xf32>
    %82 = arith.addf %78, %81 : vector<16x1xf32>
    %83 = math.rsqrt %82 : vector<16x1xf32>
    %84 = vector.broadcast %83 : vector<16x1xf32> to vector<16x32xf32>
    %85 = arith.mulf %80, %84 : vector<16x32xf32>
    %86 = vector.broadcast %66 : vector<1x32xf32> to vector<16x32xf32>
    %87 = arith.mulf %85, %86 : vector<16x32xf32>
    %88 = vector.broadcast %67 : vector<1x32xf32> to vector<16x32xf32>
    %89 = arith.addf %87, %88 : vector<16x32xf32>
    %90 = arith.truncf %89 : vector<16x32xf32> to vector<16x32xbf16>
    %c1 = arith.constant 1 : index
    %c0_53 = arith.constant 0 : index
    %c0_54 = arith.constant 0 : index
    %91 = vector.load %arg8[%c1, %c0_53, %c0_54] : memref<5x32x32xbf16, #tpu.memory_space<vmem>>, vector<1x32x32xbf16>
    %92 = vector.shape_cast %91 : vector<1x32x32xbf16> to vector<32x32xbf16>
    %cst_55 = arith.constant dense<0.000000e+00> : vector<16x32xf32>
    %93 = tpu.matmul %90, %92, %cst_55 {dimension_numbers = #tpu.dot_dimension_numbers<[1], [0], [0], [1], [0, 0, 1, 1], [], []>} : vector<16x32xbf16>, vector<32x32xbf16>, vector<16x32xf32> -> vector<16x32xf32>
    %c1_56 = arith.constant 1 : index
    %c0_57 = arith.constant 0 : index
    %94 = vector.load %arg9[%c1_56, %c0_57] : memref<5x32xf32, #tpu.memory_space<vmem>>, vector<1x32xf32>
    %95 = vector.broadcast %94 : vector<1x32xf32> to vector<16x32xf32>
    %96 = arith.addf %93, %95 : vector<16x32xf32>
    %97 = arith.addf %89, %96 : vector<16x32xf32>
    %c1_58 = arith.constant 1 : index
    %c0_59 = arith.constant 0 : index
    %98 = vector.load %arg14[%c1_58, %c0_59] : memref<5x32xf32, #tpu.memory_space<vmem>>, vector<1x32xf32>
    %c1_60 = arith.constant 1 : index
    %c0_61 = arith.constant 0 : index
    %99 = vector.load %arg15[%c1_60, %c0_61] : memref<5x32xf32, #tpu.memory_space<vmem>>, vector<1x32xf32>
    %cst_62 = arith.constant dense<0.000000e+00> : vector<16xf32>
    %100 = vector.multi_reduction <add>, %97, %cst_62 [1] : vector<16x32xf32> to vector<16xf32>
    %101 = vector.shape_cast %100 : vector<16xf32> to vector<16x1xf32>
    %102 = arith.mulf %97, %97 : vector<16x32xf32>
    %cst_63 = arith.constant dense<0.000000e+00> : vector<16xf32>
    %103 = vector.multi_reduction <add>, %102, %cst_63 [1] : vector<16x32xf32> to vector<16xf32>
    %104 = vector.shape_cast %103 : vector<16xf32> to vector<16x1xf32>
    %cst_64 = arith.constant 3.125000e-02 : f32
    %105 = vector.broadcast %cst_64 : f32 to vector<16x1xf32>
    %106 = arith.mulf %101, %105 : vector<16x1xf32>
    %cst_65 = arith.constant 3.125000e-02 : f32
    %107 = vector.broadcast %cst_65 : f32 to vector<16x1xf32>
    %108 = arith.mulf %104, %107 : vector<16x1xf32>
    %109 = arith.mulf %106, %106 : vector<16x1xf32>
    %110 = arith.subf %108, %109 : vector<16x1xf32>
    %111 = vector.broadcast %106 : vector<16x1xf32> to vector<16x32xf32>
    %112 = arith.subf %97, %111 : vector<16x32xf32>
    %cst_66 = arith.constant 9.99999974E-6 : f32
    %113 = vector.broadcast %cst_66 : f32 to vector<16x1xf32>
    %114 = arith.addf %110, %113 : vector<16x1xf32>
    %115 = math.rsqrt %114 : vector<16x1xf32>
    %116 = vector.broadcast %115 : vector<16x1xf32> to vector<16x32xf32>
    %117 = arith.mulf %112, %116 : vector<16x32xf32>
    %118 = vector.broadcast %98 : vector<1x32xf32> to vector<16x32xf32>
    %119 = arith.mulf %117, %118 : vector<16x32xf32>
    %120 = vector.broadcast %99 : vector<1x32xf32> to vector<16x32xf32>
    %121 = arith.addf %119, %120 : vector<16x32xf32>
    %122 = arith.truncf %121 : vector<16x32xf32> to vector<16x32xbf16>
    %c1_67 = arith.constant 1 : index
    %c0_68 = arith.constant 0 : index
    %c0_69 = arith.constant 0 : index
    %123 = vector.load %arg10[%c1_67, %c0_68, %c0_69] : memref<5x32x128xbf16, #tpu.memory_space<vmem>>, vector<1x32x128xbf16>
    %124 = vector.shape_cast %123 : vector<1x32x128xbf16> to vector<32x128xbf16>
    %cst_70 = arith.constant dense<0.000000e+00> : vector<16x128xf32>
    %125 = tpu.matmul %122, %124, %cst_70 {dimension_numbers = #tpu.dot_dimension_numbers<[1], [0], [0], [1], [0, 0, 1, 1], [], []>} : vector<16x32xbf16>, vector<32x128xbf16>, vector<16x128xf32> -> vector<16x128xf32>
    %c1_71 = arith.constant 1 : index
    %c0_72 = arith.constant 0 : index
    %126 = vector.load %arg11[%c1_71, %c0_72] : memref<5x128xf32, #tpu.memory_space<vmem>>, vector<1x128xf32>
    %127 = vector.broadcast %126 : vector<1x128xf32> to vector<16x128xf32>
    %128 = arith.addf %125, %127 : vector<16x128xf32>
    %cst_73 = arith.constant 0.000000e+00 : f32
    %129 = vector.broadcast %cst_73 : f32 to vector<16x128xf32>
    %130 = arith.maximumf %128, %129 : vector<16x128xf32>
    %131 = arith.truncf %130 : vector<16x128xf32> to vector<16x128xbf16>
    %c1_74 = arith.constant 1 : index
    %c0_75 = arith.constant 0 : index
    %c0_76 = arith.constant 0 : index
    %132 = vector.load %arg12[%c1_74, %c0_75, %c0_76] : memref<5x128x32xbf16, #tpu.memory_space<vmem>>, vector<1x128x32xbf16>
    %133 = vector.shape_cast %132 : vector<1x128x32xbf16> to vector<128x32xbf16>
    %cst_77 = arith.constant dense<0.000000e+00> : vector<16x32xf32>
    %134 = tpu.matmul %131, %133, %cst_77 {dimension_numbers = #tpu.dot_dimension_numbers<[1], [0], [0], [1], [0, 0, 1, 1], [], []>} : vector<16x128xbf16>, vector<128x32xbf16>, vector<16x32xf32> -> vector<16x32xf32>
    %c1_78 = arith.constant 1 : index
    %c0_79 = arith.constant 0 : index
    %135 = vector.load %arg13[%c1_78, %c0_79] : memref<5x32xf32, #tpu.memory_space<vmem>>, vector<1x32xf32>
    %136 = vector.broadcast %135 : vector<1x32xf32> to vector<16x32xf32>
    %137 = arith.addf %134, %136 : vector<16x32xf32>
    %138 = arith.addf %121, %137 : vector<16x32xf32>
    %c1_80 = arith.constant 1 : index
    %c0_81 = arith.constant 0 : index
    %139 = vector.load %arg16[%c1_80, %c0_81] : memref<5x32xf32, #tpu.memory_space<vmem>>, vector<1x32xf32>
    %c1_82 = arith.constant 1 : index
    %c0_83 = arith.constant 0 : index
    %140 = vector.load %arg17[%c1_82, %c0_83] : memref<5x32xf32, #tpu.memory_space<vmem>>, vector<1x32xf32>
    %cst_84 = arith.constant dense<0.000000e+00> : vector<16xf32>
    %141 = vector.multi_reduction <add>, %138, %cst_84 [1] : vector<16x32xf32> to vector<16xf32>
    %142 = vector.shape_cast %141 : vector<16xf32> to vector<16x1xf32>
    %143 = arith.mulf %138, %138 : vector<16x32xf32>
    %cst_85 = arith.constant dense<0.000000e+00> : vector<16xf32>
    %144 = vector.multi_reduction <add>, %143, %cst_85 [1] : vector<16x32xf32> to vector<16xf32>
    %145 = vector.shape_cast %144 : vector<16xf32> to vector<16x1xf32>
    %cst_86 = arith.constant 3.125000e-02 : f32
    %146 = vector.broadcast %cst_86 : f32 to vector<16x1xf32>
    %147 = arith.mulf %142, %146 : vector<16x1xf32>
    %cst_87 = arith.constant 3.125000e-02 : f32
    %148 = vector.broadcast %cst_87 : f32 to vector<16x1xf32>
    %149 = arith.mulf %145, %148 : vector<16x1xf32>
    %150 = arith.mulf %147, %147 : vector<16x1xf32>
    %151 = arith.subf %149, %150 : vector<16x1xf32>
    %152 = vector.broadcast %147 : vector<16x1xf32> to vector<16x32xf32>
    %153 = arith.subf %138, %152 : vector<16x32xf32>
    %cst_88 = arith.constant 9.99999974E-6 : f32
    %154 = vector.broadcast %cst_88 : f32 to vector<16x1xf32>
    %155 = arith.addf %151, %154 : vector<16x1xf32>
    %156 = math.rsqrt %155 : vector<16x1xf32>
    %157 = vector.broadcast %156 : vector<16x1xf32> to vector<16x32xf32>
    %158 = arith.mulf %153, %157 : vector<16x32xf32>
    %159 = vector.broadcast %139 : vector<1x32xf32> to vector<16x32xf32>
    %160 = arith.mulf %158, %159 : vector<16x32xf32>
    %161 = vector.broadcast %140 : vector<1x32xf32> to vector<16x32xf32>
    %162 = arith.addf %160, %161 : vector<16x32xf32>
    %163 = arith.mulf %1, %5 : vector<1x192xf32>
    %164 = arith.truncf %163 : vector<1x192xf32> to vector<1x192xbf16>
    %c1_89 = arith.constant 1 : index
    %c0_90 = arith.constant 0 : index
    %c0_91 = arith.constant 0 : index
    %165 = vector.load %arg4[%c1_89, %c0_90, %c0_91] : memref<2x192x32xbf16, #tpu.memory_space<vmem>>, vector<1x192x32xbf16>
    %166 = vector.shape_cast %165 : vector<1x192x32xbf16> to vector<192x32xbf16>
    %cst_92 = arith.constant dense<0.000000e+00> : vector<1x32xf32>
    %167 = tpu.matmul %164, %166, %cst_92 {dimension_numbers = #tpu.dot_dimension_numbers<[1], [0], [0], [1], [0, 0, 1, 1], [], []>} : vector<1x192xbf16>, vector<192x32xbf16>, vector<1x32xf32> -> vector<1x32xf32>
    %c1_93 = arith.constant 1 : index
    %c0_94 = arith.constant 0 : index
    %168 = vector.load %arg5[%c1_93, %c0_94] : memref<2x32xf32, #tpu.memory_space<vmem>>, vector<1x32xf32>
    %169 = arith.addf %167, %168 : vector<1x32xf32>
    %c1_95 = arith.constant 1 : index
    %c0_96 = arith.constant 0 : index
    %c0_97 = arith.constant 0 : index
    %170 = vector.load %arg6[%c1_95, %c0_96, %c0_97] : memref<2x16x32xf32, #tpu.memory_space<vmem>>, vector<1x16x32xf32>
    %171 = vector.shape_cast %170 : vector<1x16x32xf32> to vector<16x32xf32>
    %172 = vector.broadcast %169 : vector<1x32xf32> to vector<16x32xf32>
    %173 = arith.addf %171, %172 : vector<16x32xf32>
    %174 = arith.truncf %173 : vector<16x32xf32> to vector<16x32xbf16>
    %c2 = arith.constant 2 : index
    %c0_98 = arith.constant 0 : index
    %c0_99 = arith.constant 0 : index
    %175 = vector.load %arg8[%c2, %c0_98, %c0_99] : memref<5x32x32xbf16, #tpu.memory_space<vmem>>, vector<1x32x32xbf16>
    %176 = vector.shape_cast %175 : vector<1x32x32xbf16> to vector<32x32xbf16>
    %cst_100 = arith.constant dense<0.000000e+00> : vector<16x32xf32>
    %177 = tpu.matmul %174, %176, %cst_100 {dimension_numbers = #tpu.dot_dimension_numbers<[1], [0], [0], [1], [0, 0, 1, 1], [], []>} : vector<16x32xbf16>, vector<32x32xbf16>, vector<16x32xf32> -> vector<16x32xf32>
    %c2_101 = arith.constant 2 : index
    %c0_102 = arith.constant 0 : index
    %178 = vector.load %arg9[%c2_101, %c0_102] : memref<5x32xf32, #tpu.memory_space<vmem>>, vector<1x32xf32>
    %179 = vector.broadcast %178 : vector<1x32xf32> to vector<16x32xf32>
    %180 = arith.addf %177, %179 : vector<16x32xf32>
    %181 = arith.addf %173, %180 : vector<16x32xf32>
    %c2_103 = arith.constant 2 : index
    %c0_104 = arith.constant 0 : index
    %182 = vector.load %arg14[%c2_103, %c0_104] : memref<5x32xf32, #tpu.memory_space<vmem>>, vector<1x32xf32>
    %c2_105 = arith.constant 2 : index
    %c0_106 = arith.constant 0 : index
    %183 = vector.load %arg15[%c2_105, %c0_106] : memref<5x32xf32, #tpu.memory_space<vmem>>, vector<1x32xf32>
    %cst_107 = arith.constant dense<0.000000e+00> : vector<16xf32>
    %184 = vector.multi_reduction <add>, %181, %cst_107 [1] : vector<16x32xf32> to vector<16xf32>
    %185 = vector.shape_cast %184 : vector<16xf32> to vector<16x1xf32>
    %186 = arith.mulf %181, %181 : vector<16x32xf32>
    %cst_108 = arith.constant dense<0.000000e+00> : vector<16xf32>
    %187 = vector.multi_reduction <add>, %186, %cst_108 [1] : vector<16x32xf32> to vector<16xf32>
    %188 = vector.shape_cast %187 : vector<16xf32> to vector<16x1xf32>
    %cst_109 = arith.constant 3.125000e-02 : f32
    %189 = vector.broadcast %cst_109 : f32 to vector<16x1xf32>
    %190 = arith.mulf %185, %189 : vector<16x1xf32>
    %cst_110 = arith.constant 3.125000e-02 : f32
    %191 = vector.broadcast %cst_110 : f32 to vector<16x1xf32>
    %192 = arith.mulf %188, %191 : vector<16x1xf32>
    %193 = arith.mulf %190, %190 : vector<16x1xf32>
    %194 = arith.subf %192, %193 : vector<16x1xf32>
    %195 = vector.broadcast %190 : vector<16x1xf32> to vector<16x32xf32>
    %196 = arith.subf %181, %195 : vector<16x32xf32>
    %cst_111 = arith.constant 9.99999974E-6 : f32
    %197 = vector.broadcast %cst_111 : f32 to vector<16x1xf32>
    %198 = arith.addf %194, %197 : vector<16x1xf32>
    %199 = math.rsqrt %198 : vector<16x1xf32>
    %200 = vector.broadcast %199 : vector<16x1xf32> to vector<16x32xf32>
    %201 = arith.mulf %196, %200 : vector<16x32xf32>
    %202 = vector.broadcast %182 : vector<1x32xf32> to vector<16x32xf32>
    %203 = arith.mulf %201, %202 : vector<16x32xf32>
    %204 = vector.broadcast %183 : vector<1x32xf32> to vector<16x32xf32>
    %205 = arith.addf %203, %204 : vector<16x32xf32>
    %206 = arith.truncf %205 : vector<16x32xf32> to vector<16x32xbf16>
    %c2_112 = arith.constant 2 : index
    %c0_113 = arith.constant 0 : index
    %c0_114 = arith.constant 0 : index
    %207 = vector.load %arg10[%c2_112, %c0_113, %c0_114] : memref<5x32x128xbf16, #tpu.memory_space<vmem>>, vector<1x32x128xbf16>
    %208 = vector.shape_cast %207 : vector<1x32x128xbf16> to vector<32x128xbf16>
    %cst_115 = arith.constant dense<0.000000e+00> : vector<16x128xf32>
    %209 = tpu.matmul %206, %208, %cst_115 {dimension_numbers = #tpu.dot_dimension_numbers<[1], [0], [0], [1], [0, 0, 1, 1], [], []>} : vector<16x32xbf16>, vector<32x128xbf16>, vector<16x128xf32> -> vector<16x128xf32>
    %c2_116 = arith.constant 2 : index
    %c0_117 = arith.constant 0 : index
    %210 = vector.load %arg11[%c2_116, %c0_117] : memref<5x128xf32, #tpu.memory_space<vmem>>, vector<1x128xf32>
    %211 = vector.broadcast %210 : vector<1x128xf32> to vector<16x128xf32>
    %212 = arith.addf %209, %211 : vector<16x128xf32>
    %cst_118 = arith.constant 0.000000e+00 : f32
    %213 = vector.broadcast %cst_118 : f32 to vector<16x128xf32>
    %214 = arith.maximumf %212, %213 : vector<16x128xf32>
    %215 = arith.truncf %214 : vector<16x128xf32> to vector<16x128xbf16>
    %c2_119 = arith.constant 2 : index
    %c0_120 = arith.constant 0 : index
    %c0_121 = arith.constant 0 : index
    %216 = vector.load %arg12[%c2_119, %c0_120, %c0_121] : memref<5x128x32xbf16, #tpu.memory_space<vmem>>, vector<1x128x32xbf16>
    %217 = vector.shape_cast %216 : vector<1x128x32xbf16> to vector<128x32xbf16>
    %cst_122 = arith.constant dense<0.000000e+00> : vector<16x32xf32>
    %218 = tpu.matmul %215, %217, %cst_122 {dimension_numbers = #tpu.dot_dimension_numbers<[1], [0], [0], [1], [0, 0, 1, 1], [], []>} : vector<16x128xbf16>, vector<128x32xbf16>, vector<16x32xf32> -> vector<16x32xf32>
    %c2_123 = arith.constant 2 : index
    %c0_124 = arith.constant 0 : index
    %219 = vector.load %arg13[%c2_123, %c0_124] : memref<5x32xf32, #tpu.memory_space<vmem>>, vector<1x32xf32>
    %220 = vector.broadcast %219 : vector<1x32xf32> to vector<16x32xf32>
    %221 = arith.addf %218, %220 : vector<16x32xf32>
    %222 = arith.addf %205, %221 : vector<16x32xf32>
    %c2_125 = arith.constant 2 : index
    %c0_126 = arith.constant 0 : index
    %223 = vector.load %arg16[%c2_125, %c0_126] : memref<5x32xf32, #tpu.memory_space<vmem>>, vector<1x32xf32>
    %c2_127 = arith.constant 2 : index
    %c0_128 = arith.constant 0 : index
    %224 = vector.load %arg17[%c2_127, %c0_128] : memref<5x32xf32, #tpu.memory_space<vmem>>, vector<1x32xf32>
    %cst_129 = arith.constant dense<0.000000e+00> : vector<16xf32>
    %225 = vector.multi_reduction <add>, %222, %cst_129 [1] : vector<16x32xf32> to vector<16xf32>
    %226 = vector.shape_cast %225 : vector<16xf32> to vector<16x1xf32>
    %227 = arith.mulf %222, %222 : vector<16x32xf32>
    %cst_130 = arith.constant dense<0.000000e+00> : vector<16xf32>
    %228 = vector.multi_reduction <add>, %227, %cst_130 [1] : vector<16x32xf32> to vector<16xf32>
    %229 = vector.shape_cast %228 : vector<16xf32> to vector<16x1xf32>
    %cst_131 = arith.constant 3.125000e-02 : f32
    %230 = vector.broadcast %cst_131 : f32 to vector<16x1xf32>
    %231 = arith.mulf %226, %230 : vector<16x1xf32>
    %cst_132 = arith.constant 3.125000e-02 : f32
    %232 = vector.broadcast %cst_132 : f32 to vector<16x1xf32>
    %233 = arith.mulf %229, %232 : vector<16x1xf32>
    %234 = arith.mulf %231, %231 : vector<16x1xf32>
    %235 = arith.subf %233, %234 : vector<16x1xf32>
    %236 = vector.broadcast %231 : vector<16x1xf32> to vector<16x32xf32>
    %237 = arith.subf %222, %236 : vector<16x32xf32>
    %cst_133 = arith.constant 9.99999974E-6 : f32
    %238 = vector.broadcast %cst_133 : f32 to vector<16x1xf32>
    %239 = arith.addf %235, %238 : vector<16x1xf32>
    %240 = math.rsqrt %239 : vector<16x1xf32>
    %241 = vector.broadcast %240 : vector<16x1xf32> to vector<16x32xf32>
    %242 = arith.mulf %237, %241 : vector<16x32xf32>
    %243 = vector.broadcast %223 : vector<1x32xf32> to vector<16x32xf32>
    %244 = arith.mulf %242, %243 : vector<16x32xf32>
    %245 = vector.broadcast %224 : vector<1x32xf32> to vector<16x32xf32>
    %246 = arith.addf %244, %245 : vector<16x32xf32>
    %247 = arith.truncf %246 : vector<16x32xf32> to vector<16x32xbf16>
    %c3 = arith.constant 3 : index
    %c0_134 = arith.constant 0 : index
    %c0_135 = arith.constant 0 : index
    %248 = vector.load %arg8[%c3, %c0_134, %c0_135] : memref<5x32x32xbf16, #tpu.memory_space<vmem>>, vector<1x32x32xbf16>
    %249 = vector.shape_cast %248 : vector<1x32x32xbf16> to vector<32x32xbf16>
    %cst_136 = arith.constant dense<0.000000e+00> : vector<16x32xf32>
    %250 = tpu.matmul %247, %249, %cst_136 {dimension_numbers = #tpu.dot_dimension_numbers<[1], [0], [0], [1], [0, 0, 1, 1], [], []>} : vector<16x32xbf16>, vector<32x32xbf16>, vector<16x32xf32> -> vector<16x32xf32>
    %c3_137 = arith.constant 3 : index
    %c0_138 = arith.constant 0 : index
    %251 = vector.load %arg9[%c3_137, %c0_138] : memref<5x32xf32, #tpu.memory_space<vmem>>, vector<1x32xf32>
    %252 = vector.broadcast %251 : vector<1x32xf32> to vector<16x32xf32>
    %253 = arith.addf %250, %252 : vector<16x32xf32>
    %254 = arith.addf %246, %253 : vector<16x32xf32>
    %c3_139 = arith.constant 3 : index
    %c0_140 = arith.constant 0 : index
    %255 = vector.load %arg14[%c3_139, %c0_140] : memref<5x32xf32, #tpu.memory_space<vmem>>, vector<1x32xf32>
    %c3_141 = arith.constant 3 : index
    %c0_142 = arith.constant 0 : index
    %256 = vector.load %arg15[%c3_141, %c0_142] : memref<5x32xf32, #tpu.memory_space<vmem>>, vector<1x32xf32>
    %cst_143 = arith.constant dense<0.000000e+00> : vector<16xf32>
    %257 = vector.multi_reduction <add>, %254, %cst_143 [1] : vector<16x32xf32> to vector<16xf32>
    %258 = vector.shape_cast %257 : vector<16xf32> to vector<16x1xf32>
    %259 = arith.mulf %254, %254 : vector<16x32xf32>
    %cst_144 = arith.constant dense<0.000000e+00> : vector<16xf32>
    %260 = vector.multi_reduction <add>, %259, %cst_144 [1] : vector<16x32xf32> to vector<16xf32>
    %261 = vector.shape_cast %260 : vector<16xf32> to vector<16x1xf32>
    %cst_145 = arith.constant 3.125000e-02 : f32
    %262 = vector.broadcast %cst_145 : f32 to vector<16x1xf32>
    %263 = arith.mulf %258, %262 : vector<16x1xf32>
    %cst_146 = arith.constant 3.125000e-02 : f32
    %264 = vector.broadcast %cst_146 : f32 to vector<16x1xf32>
    %265 = arith.mulf %261, %264 : vector<16x1xf32>
    %266 = arith.mulf %263, %263 : vector<16x1xf32>
    %267 = arith.subf %265, %266 : vector<16x1xf32>
    %268 = vector.broadcast %263 : vector<16x1xf32> to vector<16x32xf32>
    %269 = arith.subf %254, %268 : vector<16x32xf32>
    %cst_147 = arith.constant 9.99999974E-6 : f32
    %270 = vector.broadcast %cst_147 : f32 to vector<16x1xf32>
    %271 = arith.addf %267, %270 : vector<16x1xf32>
    %272 = math.rsqrt %271 : vector<16x1xf32>
    %273 = vector.broadcast %272 : vector<16x1xf32> to vector<16x32xf32>
    %274 = arith.mulf %269, %273 : vector<16x32xf32>
    %275 = vector.broadcast %255 : vector<1x32xf32> to vector<16x32xf32>
    %276 = arith.mulf %274, %275 : vector<16x32xf32>
    %277 = vector.broadcast %256 : vector<1x32xf32> to vector<16x32xf32>
    %278 = arith.addf %276, %277 : vector<16x32xf32>
    %279 = arith.truncf %278 : vector<16x32xf32> to vector<16x32xbf16>
    %c3_148 = arith.constant 3 : index
    %c0_149 = arith.constant 0 : index
    %c0_150 = arith.constant 0 : index
    %280 = vector.load %arg10[%c3_148, %c0_149, %c0_150] : memref<5x32x128xbf16, #tpu.memory_space<vmem>>, vector<1x32x128xbf16>
    %281 = vector.shape_cast %280 : vector<1x32x128xbf16> to vector<32x128xbf16>
    %cst_151 = arith.constant dense<0.000000e+00> : vector<16x128xf32>
    %282 = tpu.matmul %279, %281, %cst_151 {dimension_numbers = #tpu.dot_dimension_numbers<[1], [0], [0], [1], [0, 0, 1, 1], [], []>} : vector<16x32xbf16>, vector<32x128xbf16>, vector<16x128xf32> -> vector<16x128xf32>
    %c3_152 = arith.constant 3 : index
    %c0_153 = arith.constant 0 : index
    %283 = vector.load %arg11[%c3_152, %c0_153] : memref<5x128xf32, #tpu.memory_space<vmem>>, vector<1x128xf32>
    %284 = vector.broadcast %283 : vector<1x128xf32> to vector<16x128xf32>
    %285 = arith.addf %282, %284 : vector<16x128xf32>
    %cst_154 = arith.constant 0.000000e+00 : f32
    %286 = vector.broadcast %cst_154 : f32 to vector<16x128xf32>
    %287 = arith.maximumf %285, %286 : vector<16x128xf32>
    %288 = arith.truncf %287 : vector<16x128xf32> to vector<16x128xbf16>
    %c3_155 = arith.constant 3 : index
    %c0_156 = arith.constant 0 : index
    %c0_157 = arith.constant 0 : index
    %289 = vector.load %arg12[%c3_155, %c0_156, %c0_157] : memref<5x128x32xbf16, #tpu.memory_space<vmem>>, vector<1x128x32xbf16>
    %290 = vector.shape_cast %289 : vector<1x128x32xbf16> to vector<128x32xbf16>
    %cst_158 = arith.constant dense<0.000000e+00> : vector<16x32xf32>
    %291 = tpu.matmul %288, %290, %cst_158 {dimension_numbers = #tpu.dot_dimension_numbers<[1], [0], [0], [1], [0, 0, 1, 1], [], []>} : vector<16x128xbf16>, vector<128x32xbf16>, vector<16x32xf32> -> vector<16x32xf32>
    %c3_159 = arith.constant 3 : index
    %c0_160 = arith.constant 0 : index
    %292 = vector.load %arg13[%c3_159, %c0_160] : memref<5x32xf32, #tpu.memory_space<vmem>>, vector<1x32xf32>
    %293 = vector.broadcast %292 : vector<1x32xf32> to vector<16x32xf32>
    %294 = arith.addf %291, %293 : vector<16x32xf32>
    %295 = arith.addf %278, %294 : vector<16x32xf32>
    %c3_161 = arith.constant 3 : index
    %c0_162 = arith.constant 0 : index
    %296 = vector.load %arg16[%c3_161, %c0_162] : memref<5x32xf32, #tpu.memory_space<vmem>>, vector<1x32xf32>
    %c3_163 = arith.constant 3 : index
    %c0_164 = arith.constant 0 : index
    %297 = vector.load %arg17[%c3_163, %c0_164] : memref<5x32xf32, #tpu.memory_space<vmem>>, vector<1x32xf32>
    %cst_165 = arith.constant dense<0.000000e+00> : vector<16xf32>
    %298 = vector.multi_reduction <add>, %295, %cst_165 [1] : vector<16x32xf32> to vector<16xf32>
    %299 = vector.shape_cast %298 : vector<16xf32> to vector<16x1xf32>
    %300 = arith.mulf %295, %295 : vector<16x32xf32>
    %cst_166 = arith.constant dense<0.000000e+00> : vector<16xf32>
    %301 = vector.multi_reduction <add>, %300, %cst_166 [1] : vector<16x32xf32> to vector<16xf32>
    %302 = vector.shape_cast %301 : vector<16xf32> to vector<16x1xf32>
    %cst_167 = arith.constant 3.125000e-02 : f32
    %303 = vector.broadcast %cst_167 : f32 to vector<16x1xf32>
    %304 = arith.mulf %299, %303 : vector<16x1xf32>
    %cst_168 = arith.constant 3.125000e-02 : f32
    %305 = vector.broadcast %cst_168 : f32 to vector<16x1xf32>
    %306 = arith.mulf %302, %305 : vector<16x1xf32>
    %307 = arith.mulf %304, %304 : vector<16x1xf32>
    %308 = arith.subf %306, %307 : vector<16x1xf32>
    %309 = vector.broadcast %304 : vector<16x1xf32> to vector<16x32xf32>
    %310 = arith.subf %295, %309 : vector<16x32xf32>
    %cst_169 = arith.constant 9.99999974E-6 : f32
    %311 = vector.broadcast %cst_169 : f32 to vector<16x1xf32>
    %312 = arith.addf %308, %311 : vector<16x1xf32>
    %313 = math.rsqrt %312 : vector<16x1xf32>
    %314 = vector.broadcast %313 : vector<16x1xf32> to vector<16x32xf32>
    %315 = arith.mulf %310, %314 : vector<16x32xf32>
    %316 = vector.broadcast %296 : vector<1x32xf32> to vector<16x32xf32>
    %317 = arith.mulf %315, %316 : vector<16x32xf32>
    %318 = vector.broadcast %297 : vector<1x32xf32> to vector<16x32xf32>
    %319 = arith.addf %317, %318 : vector<16x32xf32>
    %c0_170 = arith.constant 0 : index
    %c0_171 = arith.constant 0 : index
    %320 = vector.load %arg7[%c0_170, %c0_171] : memref<1x32xf32, #tpu.memory_space<vmem>>, vector<1x32xf32>
    %321 = vector.shape_cast %320 : vector<1x32xf32> to vector<1x32xf32>
    %322 = vector.broadcast %321 : vector<1x32xf32> to vector<16x32xf32>
    %323 = tpu.concatenate %162, %322 in 0 : vector<16x32xf32>, vector<16x32xf32> -> vector<32x32xf32>
    %324 = arith.truncf %323 : vector<32x32xf32> to vector<32x32xbf16>
    %c4 = arith.constant 4 : index
    %c0_172 = arith.constant 0 : index
    %c0_173 = arith.constant 0 : index
    %325 = vector.load %arg8[%c4, %c0_172, %c0_173] : memref<5x32x32xbf16, #tpu.memory_space<vmem>>, vector<1x32x32xbf16>
    %326 = vector.shape_cast %325 : vector<1x32x32xbf16> to vector<32x32xbf16>
    %cst_174 = arith.constant dense<0.000000e+00> : vector<32x32xf32>
    %327 = tpu.matmul %324, %326, %cst_174 {dimension_numbers = #tpu.dot_dimension_numbers<[1], [0], [0], [1], [0, 0, 1, 1], [], []>} : vector<32x32xbf16>, vector<32x32xbf16>, vector<32x32xf32> -> vector<32x32xf32>
    %c4_175 = arith.constant 4 : index
    %c0_176 = arith.constant 0 : index
    %328 = vector.load %arg9[%c4_175, %c0_176] : memref<5x32xf32, #tpu.memory_space<vmem>>, vector<1x32xf32>
    %329 = vector.broadcast %328 : vector<1x32xf32> to vector<32x32xf32>
    %330 = arith.addf %327, %329 : vector<32x32xf32>
    %331 = arith.addf %323, %330 : vector<32x32xf32>
    %c4_177 = arith.constant 4 : index
    %c0_178 = arith.constant 0 : index
    %332 = vector.load %arg14[%c4_177, %c0_178] : memref<5x32xf32, #tpu.memory_space<vmem>>, vector<1x32xf32>
    %c4_179 = arith.constant 4 : index
    %c0_180 = arith.constant 0 : index
    %333 = vector.load %arg15[%c4_179, %c0_180] : memref<5x32xf32, #tpu.memory_space<vmem>>, vector<1x32xf32>
    %cst_181 = arith.constant dense<0.000000e+00> : vector<32xf32>
    %334 = vector.multi_reduction <add>, %331, %cst_181 [1] : vector<32x32xf32> to vector<32xf32>
    %335 = vector.shape_cast %334 : vector<32xf32> to vector<32x1xf32>
    %336 = arith.mulf %331, %331 : vector<32x32xf32>
    %cst_182 = arith.constant dense<0.000000e+00> : vector<32xf32>
    %337 = vector.multi_reduction <add>, %336, %cst_182 [1] : vector<32x32xf32> to vector<32xf32>
    %338 = vector.shape_cast %337 : vector<32xf32> to vector<32x1xf32>
    %cst_183 = arith.constant 3.125000e-02 : f32
    %339 = vector.broadcast %cst_183 : f32 to vector<32x1xf32>
    %340 = arith.mulf %335, %339 : vector<32x1xf32>
    %cst_184 = arith.constant 3.125000e-02 : f32
    %341 = vector.broadcast %cst_184 : f32 to vector<32x1xf32>
    %342 = arith.mulf %338, %341 : vector<32x1xf32>
    %343 = arith.mulf %340, %340 : vector<32x1xf32>
    %344 = arith.subf %342, %343 : vector<32x1xf32>
    %345 = vector.broadcast %340 : vector<32x1xf32> to vector<32x32xf32>
    %346 = arith.subf %331, %345 : vector<32x32xf32>
    %cst_185 = arith.constant 9.99999974E-6 : f32
    %347 = vector.broadcast %cst_185 : f32 to vector<32x1xf32>
    %348 = arith.addf %344, %347 : vector<32x1xf32>
    %349 = math.rsqrt %348 : vector<32x1xf32>
    %350 = vector.broadcast %349 : vector<32x1xf32> to vector<32x32xf32>
    %351 = arith.mulf %346, %350 : vector<32x32xf32>
    %352 = vector.broadcast %332 : vector<1x32xf32> to vector<32x32xf32>
    %353 = arith.mulf %351, %352 : vector<32x32xf32>
    %354 = vector.broadcast %333 : vector<1x32xf32> to vector<32x32xf32>
    %355 = arith.addf %353, %354 : vector<32x32xf32>
    %356 = arith.truncf %355 : vector<32x32xf32> to vector<32x32xbf16>
    %c4_186 = arith.constant 4 : index
    %c0_187 = arith.constant 0 : index
    %c0_188 = arith.constant 0 : index
    %357 = vector.load %arg10[%c4_186, %c0_187, %c0_188] : memref<5x32x128xbf16, #tpu.memory_space<vmem>>, vector<1x32x128xbf16>
    %358 = vector.shape_cast %357 : vector<1x32x128xbf16> to vector<32x128xbf16>
    %cst_189 = arith.constant dense<0.000000e+00> : vector<32x128xf32>
    %359 = tpu.matmul %356, %358, %cst_189 {dimension_numbers = #tpu.dot_dimension_numbers<[1], [0], [0], [1], [0, 0, 1, 1], [], []>} : vector<32x32xbf16>, vector<32x128xbf16>, vector<32x128xf32> -> vector<32x128xf32>
    %c4_190 = arith.constant 4 : index
    %c0_191 = arith.constant 0 : index
    %360 = vector.load %arg11[%c4_190, %c0_191] : memref<5x128xf32, #tpu.memory_space<vmem>>, vector<1x128xf32>
    %361 = vector.broadcast %360 : vector<1x128xf32> to vector<32x128xf32>
    %362 = arith.addf %359, %361 : vector<32x128xf32>
    %cst_192 = arith.constant 0.000000e+00 : f32
    %363 = vector.broadcast %cst_192 : f32 to vector<32x128xf32>
    %364 = arith.maximumf %362, %363 : vector<32x128xf32>
    %365 = arith.truncf %364 : vector<32x128xf32> to vector<32x128xbf16>
    %c4_193 = arith.constant 4 : index
    %c0_194 = arith.constant 0 : index
    %c0_195 = arith.constant 0 : index
    %366 = vector.load %arg12[%c4_193, %c0_194, %c0_195] : memref<5x128x32xbf16, #tpu.memory_space<vmem>>, vector<1x128x32xbf16>
    %367 = vector.shape_cast %366 : vector<1x128x32xbf16> to vector<128x32xbf16>
    %cst_196 = arith.constant dense<0.000000e+00> : vector<32x32xf32>
    %368 = tpu.matmul %365, %367, %cst_196 {dimension_numbers = #tpu.dot_dimension_numbers<[1], [0], [0], [1], [0, 0, 1, 1], [], []>} : vector<32x128xbf16>, vector<128x32xbf16>, vector<32x32xf32> -> vector<32x32xf32>
    %c4_197 = arith.constant 4 : index
    %c0_198 = arith.constant 0 : index
    %369 = vector.load %arg13[%c4_197, %c0_198] : memref<5x32xf32, #tpu.memory_space<vmem>>, vector<1x32xf32>
    %370 = vector.broadcast %369 : vector<1x32xf32> to vector<32x32xf32>
    %371 = arith.addf %368, %370 : vector<32x32xf32>
    %372 = arith.addf %355, %371 : vector<32x32xf32>
    %c4_199 = arith.constant 4 : index
    %c0_200 = arith.constant 0 : index
    %373 = vector.load %arg16[%c4_199, %c0_200] : memref<5x32xf32, #tpu.memory_space<vmem>>, vector<1x32xf32>
    %c4_201 = arith.constant 4 : index
    %c0_202 = arith.constant 0 : index
    %374 = vector.load %arg17[%c4_201, %c0_202] : memref<5x32xf32, #tpu.memory_space<vmem>>, vector<1x32xf32>
    %cst_203 = arith.constant dense<0.000000e+00> : vector<32xf32>
    %375 = vector.multi_reduction <add>, %372, %cst_203 [1] : vector<32x32xf32> to vector<32xf32>
    %376 = vector.shape_cast %375 : vector<32xf32> to vector<32x1xf32>
    %377 = arith.mulf %372, %372 : vector<32x32xf32>
    %cst_204 = arith.constant dense<0.000000e+00> : vector<32xf32>
    %378 = vector.multi_reduction <add>, %377, %cst_204 [1] : vector<32x32xf32> to vector<32xf32>
    %379 = vector.shape_cast %378 : vector<32xf32> to vector<32x1xf32>
    %cst_205 = arith.constant 3.125000e-02 : f32
    %380 = vector.broadcast %cst_205 : f32 to vector<32x1xf32>
    %381 = arith.mulf %376, %380 : vector<32x1xf32>
    %cst_206 = arith.constant 3.125000e-02 : f32
    %382 = vector.broadcast %cst_206 : f32 to vector<32x1xf32>
    %383 = arith.mulf %379, %382 : vector<32x1xf32>
    %384 = arith.mulf %381, %381 : vector<32x1xf32>
    %385 = arith.subf %383, %384 : vector<32x1xf32>
    %386 = vector.broadcast %381 : vector<32x1xf32> to vector<32x32xf32>
    %387 = arith.subf %372, %386 : vector<32x32xf32>
    %cst_207 = arith.constant 9.99999974E-6 : f32
    %388 = vector.broadcast %cst_207 : f32 to vector<32x1xf32>
    %389 = arith.addf %385, %388 : vector<32x1xf32>
    %390 = math.rsqrt %389 : vector<32x1xf32>
    %391 = vector.broadcast %390 : vector<32x1xf32> to vector<32x32xf32>
    %392 = arith.mulf %387, %391 : vector<32x32xf32>
    %393 = vector.broadcast %373 : vector<1x32xf32> to vector<32x32xf32>
    %394 = arith.mulf %392, %393 : vector<32x32xf32>
    %395 = vector.broadcast %374 : vector<1x32xf32> to vector<32x32xf32>
    %396 = arith.addf %394, %395 : vector<32x32xf32>
    %397 = vector.extract_strided_slice %396 {offsets = [16, 0], sizes = [16, 32], strides = [1, 1]} : vector<32x32xf32> to vector<16x32xf32>
    %398 = arith.subf %397, %319 : vector<16x32xf32>
    %399 = arith.mulf %398, %398 : vector<16x32xf32>
    %cst_208 = arith.constant dense<0.000000e+00> : vector<16xf32>
    %400 = vector.multi_reduction <add>, %399, %cst_208 [1] : vector<16x32xf32> to vector<16xf32>
    %401 = vector.shape_cast %400 : vector<16xf32> to vector<16x1xf32>
    %cst_209 = arith.constant dense<0.000000e+00> : vector<1xf32>
    %402 = vector.multi_reduction <add>, %401, %cst_209 [0] : vector<16x1xf32> to vector<1xf32>
    %403 = vector.shape_cast %402 : vector<1xf32> to vector<1x1xf32>
    %cst_210 = arith.constant 0.001953125 : f32
    %404 = vector.broadcast %cst_210 : f32 to vector<1x1xf32>
    %405 = arith.mulf %403, %404 : vector<1x1xf32>
    %c0_211 = arith.constant 0 : index
    %c0_212 = arith.constant 0 : index
    %c0_213 = arith.constant 0 : index
    %406 = vector.load %arg18[%c0_211, %c0_212, %c0_213] : memref<1x1x1xf32, #tpu.memory_space<vmem>>, vector<1x1x1xf32>
    %407 = vector.shape_cast %406 : vector<1x1x1xf32> to vector<1x1xf32>
    %408 = vector.shape_cast %405 : vector<1x1xf32> to vector<1x1x1xf32>
    tpu.vector_store %arg18[%c0_211, %c0_212, %c0_213], %408 {strides = array<i32>} : memref<1x1x1xf32, #tpu.memory_space<vmem>>, vector<1x1x1xf32>,
    return
  }
  func.func @transform_0(%arg0: i32) -> (i32, i32, i32) {
    %c0_i32 = arith.constant 0 : i32
    %c0_i32_0 = arith.constant 0 : i32
    %c0_i32_1 = arith.constant 0 : i32
    return %arg0, %c0_i32, %c0_i32_0 : i32, i32, i32
  }
  func.func @transform_1(%arg0: i32) -> (i32, i32, i32) {
    %c0_i32 = arith.constant 0 : i32
    %c0_i32_0 = arith.constant 0 : i32
    %c0_i32_1 = arith.constant 0 : i32
    return %arg0, %c0_i32, %c0_i32_0 : i32, i32, i32
  }
  func.func @transform_2(%arg0: i32) -> (i32, i32, i32) {
    %c0_i32 = arith.constant 0 : i32
    %c0_i32_0 = arith.constant 0 : i32
    %c0_i32_1 = arith.constant 0 : i32
    return %arg0, %c0_i32, %c0_i32_0 : i32, i32, i32
  }
  func.func @transform_3(%arg0: i32) -> (i32, i32, i32) {
    %c0_i32 = arith.constant 0 : i32
    %c0_i32_0 = arith.constant 0 : i32
    %c0_i32_1 = arith.constant 0 : i32
    %c0_i32_2 = arith.constant 0 : i32
    return %c0_i32, %c0_i32_0, %c0_i32_1 : i32, i32, i32
  }
  func.func @transform_4(%arg0: i32) -> (i32, i32) {
    %c0_i32 = arith.constant 0 : i32
    %c0_i32_0 = arith.constant 0 : i32
    %c0_i32_1 = arith.constant 0 : i32
    return %c0_i32, %c0_i32_0 : i32, i32
  }
  func.func @transform_5(%arg0: i32) -> (i32, i32, i32) {
    %c0_i32 = arith.constant 0 : i32
    %c0_i32_0 = arith.constant 0 : i32
    %c0_i32_1 = arith.constant 0 : i32
    %c0_i32_2 = arith.constant 0 : i32
    return %c0_i32, %c0_i32_0, %c0_i32_1 : i32, i32, i32
  }
  func.func @transform_6(%arg0: i32) -> (i32, i32) {
    %c0_i32 = arith.constant 0 : i32
    %c0_i32_0 = arith.constant 0 : i32
    %c0_i32_1 = arith.constant 0 : i32
    return %c0_i32, %c0_i32_0 : i32, i32
  }
  func.func @transform_7(%arg0: i32) -> (i32, i32, i32) {
    %c0_i32 = arith.constant 0 : i32
    %c0_i32_0 = arith.constant 0 : i32
    %c0_i32_1 = arith.constant 0 : i32
    %c0_i32_2 = arith.constant 0 : i32
    return %c0_i32, %c0_i32_0, %c0_i32_1 : i32, i32, i32
  }
  func.func @transform_8(%arg0: i32) -> (i32, i32) {
    %c0_i32 = arith.constant 0 : i32
    %c0_i32_0 = arith.constant 0 : i32
    %c0_i32_1 = arith.constant 0 : i32
    return %c0_i32, %c0_i32_0 : i32, i32
  }
  func.func @transform_9(%arg0: i32) -> (i32, i32, i32) {
    %c0_i32 = arith.constant 0 : i32
    %c0_i32_0 = arith.constant 0 : i32
    %c0_i32_1 = arith.constant 0 : i32
    %c0_i32_2 = arith.constant 0 : i32
    return %c0_i32, %c0_i32_0, %c0_i32_1 : i32, i32, i32
  }
  func.func @transform_10(%arg0: i32) -> (i32, i32) {
    %c0_i32 = arith.constant 0 : i32
    %c0_i32_0 = arith.constant 0 : i32
    %c0_i32_1 = arith.constant 0 : i32
    return %c0_i32, %c0_i32_0 : i32, i32
  }
  func.func @transform_11(%arg0: i32) -> (i32, i32, i32) {
    %c0_i32 = arith.constant 0 : i32
    %c0_i32_0 = arith.constant 0 : i32
    %c0_i32_1 = arith.constant 0 : i32
    %c0_i32_2 = arith.constant 0 : i32
    return %c0_i32, %c0_i32_0, %c0_i32_1 : i32, i32, i32
  }
  func.func @transform_12(%arg0: i32) -> (i32, i32) {
    %c0_i32 = arith.constant 0 : i32
    %c0_i32_0 = arith.constant 0 : i32
    %c0_i32_1 = arith.constant 0 : i32
    return %c0_i32, %c0_i32_0 : i32, i32
  }
  func.func @transform_13(%arg0: i32) -> (i32, i32) {
    %c0_i32 = arith.constant 0 : i32
    %c0_i32_0 = arith.constant 0 : i32
    %c0_i32_1 = arith.constant 0 : i32
    return %c0_i32, %c0_i32_0 : i32, i32
  }
  func.func @transform_14(%arg0: i32) -> (i32, i32) {
    %c0_i32 = arith.constant 0 : i32
    %c0_i32_0 = arith.constant 0 : i32
    %c0_i32_1 = arith.constant 0 : i32
    return %c0_i32, %c0_i32_0 : i32, i32
  }
  func.func @transform_15(%arg0: i32) -> (i32, i32) {
    %c0_i32 = arith.constant 0 : i32
    %c0_i32_0 = arith.constant 0 : i32
    %c0_i32_1 = arith.constant 0 : i32
    return %c0_i32, %c0_i32_0 : i32, i32
  }
  func.func @transform_16(%arg0: i32) -> (i32, i32) {
    %c0_i32 = arith.constant 0 : i32
    %c0_i32_0 = arith.constant 0 : i32
    %c0_i32_1 = arith.constant 0 : i32
    return %c0_i32, %c0_i32_0 : i32, i32
  }
  func.func @transform_17(%arg0: i32) -> (i32, i32, i32) {
    %c0_i32 = arith.constant 0 : i32
    %c0_i32_0 = arith.constant 0 : i32
    %c0_i32_1 = arith.constant 0 : i32
    return %arg0, %c0_i32, %c0_i32_0 : i32, i32, i32
  }
}

</mosaic_0001>

<bundles_post_ra>
// kernel: tpu_custom_call.1
= control target key start
LH: loop header
LB: loop body
LE: loop exit
PB: predicated region body
PF: predicated region fallthrough
CT: control target
= control target key end

     0   :  { %s3154_s24 = smov 0   ;;  %s3801_s0 = inlined_call_operand.vmem [shape: f32[8,1,192], index: 0, kind: input, shape index: {}]   ;;  %s3802_s1 = inlined_call_operand.vmem [shape: f32[8,1,192], index: 1, kind: input, shape index: {}]   ;;  %s3803_s2 = inlined_call_operand.vmem [shape: f32[8,1,192], index: 2, kind: input, shape index: {}]   ;;  %s3804_s3 = inlined_call_operand.vmem [shape: bf16[2,192,32], index: 3, kind: input, shape index: {}]   ;;  %s3805_s4 = inlined_call_operand.vmem [shape: f32[2,32], index: 4, kind: input, shape index: {}]   ;;  %s3806_s5 = inlined_call_operand.vmem [shape: f32[2,16,32], index: 5, kind: input, shape index: {}]   ;;  %s3807_s6 = inlined_call_operand.vmem [shape: f32[1,32], index: 6, kind: input, shape index: {}]   ;;  %s3808_s7 = inlined_call_operand.vmem [shape: bf16[5,32,32], index: 7, kind: input, shape index: {}]   ;;  %s3809_s8 = inlined_call_operand.vmem [shape: f32[5,32], index: 8, kind: input, shape index: {}]   ;;  %s3810_s9 = inlined_call_operand.vmem [shape: bf16[5,32,128], index: 9, kind: input, shape index: {}]   ;;  %s3811_s10 = inlined_call_operand.vmem [shape: f32[5,128], index: 10, kind: input, shape index: {}]   ;;  %s3812_s11 = inlined_call_operand.vmem [shape: bf16[5,128,32], index: 11, kind: input, shape index: {}]   ;;  %s3813_s12 = inlined_call_operand.vmem [shape: f32[5,32], index: 12, kind: input, shape index: {}]   ;;  %s3814_s13 = inlined_call_operand.vmem [shape: f32[5,32], index: 13, kind: input, shape index: {}]   ;;  %s3815_s14 = inlined_call_operand.vmem [shape: f32[5,32], index: 14, kind: input, shape index: {}]   ;;  %s3816_s15 = inlined_call_operand.vmem [shape: f32[5,32], index: 15, kind: input, shape index: {}]   ;;  %s3817_s16 = inlined_call_operand.vmem [shape: f32[5,32], index: 16, kind: input, shape index: {}]   ;;  %s3818_s17 = inlined_call_operand.vmem [shape: f32[8,1,1], index: 17, kind: output, shape index: {}]  }
   0x1   :  { %3819 = sst [smem:[#allocation2_spill]] %s3801_s0 }
   0x2   :  { %3820 = sst [smem:[#allocation3_spill]] %s3802_s1 }
   0x3 LB: > { %s2402_s25 = sadd.s32 4294967295, %s3062_s24   ;;  %p2406_p0 = scmp.ge.s32.totalorder %s3062_s24, 1  ;;  %s3062_s24 = sphi %s3154_s24, %s27_s24  }
   0x4   : > { %p504_p1 = scmp.lt.s32.totalorder %s3062_s24, 9 }
   0x6   : > { %p505_p2 = pnand %p2406_p0, %p504_p1 }
   0x7   : > { %p561_p3 = scmp.lt.s32.totalorder (!%p505_p2), %s2402_s25, 7  ;;  %s3821_s28 = sld [smem:[#allocation2_spill]] (!%p505_p2) }
   0x8   : > { %508 = sbr.rel (%p505_p2) target bundleno = 2990 (0xbae), region = 88  ;;  %s3822_s18 = sld [smem:[#allocation3_spill]] (!%p505_p2) }
   0xd   : > { %v2891_v0 = vld [vmem:[%s3804_s3 + $0x38] sm:$0xff]  ;;  %v2890_v2 = vld [vmem:[%s3804_s3 + $0x30] sm:$0xff]  ;;  %s3826_s25 = smov (!%p561_p3, %s2402_s25), 7  ;;  %v2889_v4 = vld [vmem:[%s3804_s3 + $0x28] sm:$0xff]  ;;  %vm685_vm0 = vcmask 523264   ;;  %vm739_vm1 = vcmask 261120  }
   0xe   : > { %v2895_v1 = vld [vmem:[%s3804_s3 + $0x58] sm:$0xff]  ;;  %689 = vmatpush.bf16.msra.mxu0 %v2891_v0  ;;  %v2894_v3 = vld [vmem:[%s3804_s3 + $0x50] sm:$0xff]  ;;  %s3180_s21 = sshll.u32 %s3826_s25, 1  ;;  %v2893_v5 = vld [vmem:[%s3804_s3 + $0x48] sm:$0xff]  ;;  %s575_s26 = scalar_lea.vmem %s3818_s17, %s3826_s25 }
   0xf   : > { %706 = vmatpush.bf16.msra.mxu1 %v2895_v1  ;;  %s564_s29 = scalar_lea.vmem %s3821_s28, %s3180_s21  ;;  %s568_s19 = scalar_lea.vmem %s3822_s18, %s3180_s21  ;;  %v2888_v9 = vld [vmem:[%s3804_s3 + $0x20] sm:$0xff]  ;;  %v2887_v12 = vld [vmem:[%s3804_s3 + $0x18] sm:$0xff]  ;;  %v2886_v14 = vld [vmem:[%s3804_s3 + $0x10] sm:$0xff] }
  0x10   : > { %v3193_v6 = vld [vmem:[%s564_s29] sm:$0x3]  ;;  %v2885_v15 = vld [vmem:[%s3804_s3 + $0x8] sm:$0xff]  ;;  %v2907_v61 = vld [vmem:[%s3812_s11 + $0x38] sm:$0xff]  ;;  %s572_s18 = scalar_lea.vmem %s3803_s2, %s3180_s21 }
  0x11   : > { %v578_v7 = vld [vmem:[%s568_s19] sm:$0x3]  ;;  %v2897_v19 = vld [vmem:[%s3808_s7 + $0x8] sm:$0xff]  ;;  %v2906_v63 = vld [vmem:[%s3812_s11 + $0x30] sm:$0xff] }
  0x12   : > { %690 = vmatpush.bf16.msra.mxu0 %v2890_v2  ;;  %v580_v8 = vmul.f32 %v578_v7, %v3193_v6  ;;  %v2892_v10 = vld [vmem:[%s3804_s3 + $0x40] sm:$0xff]  ;;  %749 = vmatpush.bf16.msra.mxu2 %v2897_v19  ;;  %v716_v28 = vld [vmem:[%s3806_s5 + $0x8] sm:$0xff] }
  0x13   : > { %707 = vmatpush.bf16.msra.mxu1 %v2894_v3  ;;  %v2884_v17 = vld [vmem:[%s3804_s3] sm:$0xff]  ;;  %v2899_v50 = vld [vmem:[%s3810_s9 + $0x8] sm:$0xff] }
  0x14   : > { %v583_v11 = vperm.slane %v580_v8, 1  ;;  %v582_v16 = vperm.slane %v580_v8, 0  ;;  %v2896_v20 = vld [vmem:[%s3808_s7] sm:$0xff]  ;;  %843 = vmatpush.bf16.msra.mxu3 %v2899_v50  ;;  %v2905_v3 = vld [vmem:[%s3812_s11 + $0x28] sm:$0xff] }
  0x15   : > { %v612_v23 = vld [vmem:[%s3805_s4] sm:$0x1] }
  0x16   : > { %691 = vmatpush.bf16.msra.mxu0 %v2889_v4  ;;  %v587_v13 = vpack.c.bf16 %v583_v11, %v583_v11  ;;  %v586_v18 = vpack.c.bf16 %v582_v16, %v582_v16  ;;  %750 = vmatpush.bf16.msra.mxu2 %v2896_v20  ;;  %v715_v27 = vld [vmem:[%s3806_s5] sm:$0xff] }
  0x17   : > { %708 = vmatpush.bf16.msra.mxu1 %v2893_v5  ;;  %v2976_v34 = vld [vmem:[%s3809_s8] ss:$0 sm:$0xff] }
  0x18   : > { %v2898_v53 = vld [vmem:[%s3810_s9] sm:$0xff] }
  0x19   : > { %844 = vmatpush.bf16.msra.mxu3 %v2898_v53  ;;  %v2904_v7 = vld [vmem:[%s3812_s11 + $0x20] sm:$0xff] }
  0x1a   : > { %692 = vmatpush.bf16.msra.mxu0 %v2888_v9  ;;  %920 = vmatpush.bf16.msrb.mxu2 %v2907_v61 }
  0x1b   : > { %709 = vmatpush.bf16.msra.mxu1 %v2892_v10 }
  0x1e   : > { %693 = vmatpush.bf16.msra.mxu0 %v2887_v12  ;;  %2458 = vmatmul.msk.bf16.vlgmr.msra.gmra.mxu1 %vm685_vm0, %v587_v13 }
  0x1f   : > { %921 = vmatpush.bf16.msrb.mxu2 %v2906_v63 }
  0x22   : > { %694 = vmatpush.bf16.msra.mxu0 %v2886_v14 }
  0x23   : > { %922 = vmatpush.bf16.msrb.mxu2 %v2905_v3 }
  0x26   : > { %695 = vmatpush.bf16.msra.mxu0 %v2885_v15 }
  0x27   : > { %923 = vmatpush.bf16.msrb.mxu2 %v2904_v7 }
  0x2a   : > { %696 = vmatpush.bf16.msra.mxu0 %v2884_v17 }
  0x2d   : > { %697 = vmatmul.bf16.vlgmr.msra.gmra.mxu0 %v586_v18  ;;  %v2977_v18 = vld [vmem:[%s3814_s13] ss:$0 sm:$0xff] }
  0x9b   : > { %v711_v21 = vpop.f32.mrf.mxu1 }
  0xa3   : > { %v713_v22 = vpop.f32.mrf.mxu1 }
  0xaa   : > { %v698_v24 = vpop.f32.mrf.mxu0 }
  0xab   : > { %v699_v25 = vadd.f32 %v698_v24, %v612_v23  ;;  %v2978_v24 = vld [vmem:[%s3815_s14] ss:$0 sm:$0xff] }
  0xad   : > { %v712_v26 = vadd.f32 %v711_v21, %v699_v25 }
  0xaf   : > { %v717_v29 = vperm.slane %v712_v26, 0 }
  0xb1   : > { %v718_v30 = vadd.f32 %v717_v29, %v715_v27  ;;  %v719_v31 = vadd.f32 %v717_v29, %v716_v28  ;;  %v2903_v29 = vld [vmem:[%s3812_s11 + $0x18] sm:$0xff] }
  0xb2   : > { %v700_v32 = vpop.f32.mrf.mxu0  ;;  %924 = vmatpush.bf16.msrb.mxu2 %v2903_v29 }
  0xb3   : > { %v720_v33 = vpack.c.bf16 %v719_v31, %v718_v30  ;;  %v2900_v32 = vld [vmem:[%s3812_s11] sm:$0xff] }
  0xb5   : > { %2467 = vmatmul.msk.bf16.vlgmr.msra.gmra.mxu2 %vm739_vm1, %v720_v33 }
 0x138   : > { %v752_v35 = vpop.f32.mrf.mxu2 }
 0x139   : > { %v753_v36 = vadd.f32 %v2976_v34, %v752_v35 }
 0x13b   : > { %v757_v37 = vadd.f32 %v753_v36, %v718_v30  ;;  %v2902_v30 = vld [vmem:[%s3812_s11 + $0x10] sm:$0xff] }
 0x13c   : > { %925 = vmatpush.bf16.msrb.mxu2 %v2902_v30 }
 0x13d   : > { %v761_v38 = vsel %vm739_vm1, %v757_v37, 0.0  ;;  %v767_v39 = vmul.f32 %v757_v37, %v757_v37 }
 0x13e   : > { %762 = vadd.xlane.f32.xlu0 %v761_v38 }
 0x13f   : > { %v769_v40 = vsel %vm739_vm1, %v767_v39, 0.0 }
 0x140   : > { %v754_v41 = vpop.f32.mrf.mxu2  ;;  %770 = vadd.xlane.f32.xlu1 %v769_v40 }
 0x141   : > { %v755_v42 = vadd.f32 %v2976_v34, %v754_v41  ;;  %v2979_v34 = vld [vmem:[%s3811_s10] ss:$0 sm:$0xff] }
 0x142   : > { %v2980_v41 = vld [vmem:[%s3813_s12] ss:$0 sm:$0xff] }
 0x143   : > { %v758_v43 = vadd.f32 %v755_v42, %v719_v31  ;;  %v2901_v31 = vld [vmem:[%s3812_s11 + $0x8] sm:$0xff] }
 0x144   : > { %926 = vmatpush.bf16.msrb.mxu2 %v2901_v31 }
 0x145   : > { %v764_v44 = vsel %vm739_vm1, %v758_v43, 0.0  ;;  %v768_v45 = vmul.f32 %v758_v43, %v758_v43 }
 0x146   : > { %765 = vadd.xlane.f32.xlu0 %v764_v44 }
 0x147   : > { %v772_v46 = vsel %vm739_vm1, %v768_v45, 0.0 }
 0x148   : > { %773 = vadd.xlane.f32.xlu1 %v772_v46  ;;  %927 = vmatpush.bf16.msrb.mxu2 %v2900_v32  ;;  %v2983_v32 = vld [vmem:[%s3809_s8 + $0x1] ss:$0 sm:$0xff] }
 0x1b1   : > { %v763_v47 = vpop.xlane.xlu0 %762 }
 0x1b2   : > { %v775_v48 = vmul.f32 0.03125, %v763_v47 }
 0x1b3   : > { %v771_v49 = vpop.xlane.xlu1 %770 }
 0x1b4   : > { %v779_v51 = vmul.f32 %v775_v48, %v775_v48  ;;  %v777_v52 = vmul.f32 0.03125, %v771_v49  ;;  %v783_v15 = vsub.f32 %v757_v37, %v775_v48 }
 0x1b6   : > { %v781_v54 = vsub.f32 %v777_v52, %v779_v51 }
 0x1b8   : > { %v785_v55 = vadd.f32 1e-05, %v781_v54 }
 0x1b9   : > { %v766_v56 = vpop.xlane.xlu0 %765 }
 0x1ba   : > { %3012 = vrsqrt.f32 %v785_v55  ;;  %v776_v57 = vmul.f32 0.03125, %v766_v56  ;;  %vm793_vm3 = vweird.f32 %v785_v55 }
 0x1bb   : > { %v774_v58 = vpop.xlane.xlu1 %773 }
 0x1bc   : > { %v780_v59 = vmul.f32 %v776_v57, %v776_v57  ;;  %v778_v60 = vmul.f32 0.03125, %v774_v58  ;;  %v784_v20 = vsub.f32 %v758_v43, %v776_v57  ;;  %v2909_v57 = vld [vmem:[%s3808_s7 + $0x18] sm:$0xff] }
 0x1bd   : > { %1021 = vmatpush.bf16.msrb.mxu3 %v2909_v57  ;;  %v2910_v57 = vld [vmem:[%s3810_s9 + $0x10] sm:$0xff] }
 0x1be   : > { %v782_v62 = vsub.f32 %v778_v60, %v780_v59  ;;  %v2908_v60 = vld [vmem:[%s3808_s7 + $0x10] sm:$0xff] }
 0x1c0   : > { %v3013_v0 = vpop.eup %3012  ;;  %v786_v1 = vadd.f32 1e-05, %v782_v62 }
 0x1c1   : > { %v788_v2 = vmul.f32 %v3013_v0, %v785_v55  ;;  %vm794_vm2 = vweird.f32 %v3013_v0  ;;  %1022 = vmatpush.bf16.msrb.mxu3 %v2908_v60 }
 0x1c2   : > { %3014 = vrsqrt.f32 %v786_v1  ;;  %vm795_vm4 = vmor %vm793_vm3, %vm794_vm2  ;;  %vm803_vm6 = vweird.f32 %v786_v1 }
 0x1c3   : > { %v789_v4 = vmul.f32 %v3013_v0, %v788_v2 }
 0x1c5   : > { %v790_v5 = vmul.f32 0.5, %v789_v4 }
 0x1c7   : > { %v791_v8 = vsub.f32 1.5, %v790_v5 }
 0x1c8   : > { %v3015_v9 = vpop.eup %3014 }
 0x1c9   : > { %v792_v10 = vmul.f32 %v3013_v0, %v791_v8  ;;  %v798_v11 = vmul.f32 %v3015_v9, %v786_v1  ;;  %vm804_vm5 = vweird.f32 %v3015_v9 }
 0x1ca   : > { %vm805_vm7 = vmor %vm803_vm6, %vm804_vm5 }
 0x1cb   : > { %v799_v12 = vmul.f32 %v3015_v9, %v798_v11  ;;  %v796_v13 = vsel %vm795_vm4, %v3013_v0, %v792_v10 }
 0x1cc   : > { %v807_v17 = vmul.f32 %v796_v13, %v783_v15 }
 0x1cd   : > { %v800_v14 = vmul.f32 0.5, %v799_v12 }
 0x1ce   : > { %v810_v23 = vmul.f32 %v2977_v18, %v807_v17 }
 0x1cf   : > { %v801_v16 = vsub.f32 1.5, %v800_v14 }
 0x1d0   : > { %v813_v26 = vadd.f32 %v2978_v24, %v810_v23 }
 0x1d1   : > { %v802_v19 = vmul.f32 %v3015_v9, %v801_v16 }
 0x1d3   : > { %v806_v21 = vsel %vm805_vm7, %v3015_v9, %v802_v19 }
 0x1d4   : > { %v808_v22 = vmul.f32 %v806_v21, %v784_v20  ;;  %v2981_v21 = vld [vmem:[%s3816_s15] ss:$0 sm:$0xff] }
 0x1d6   : > { %v811_v25 = vmul.f32 %v2977_v18, %v808_v22 }
 0x1d8   : > { %v814_v27 = vadd.f32 %v2978_v24, %v811_v25 }
 0x1da   : > { %v815_v28 = vpack.c.bf16 %v814_v27, %v813_v26 }
 0x1dc   : > { %2476 = vmatmul.msk.bf16.vlgmr.msra.gmra.mxu3 %vm739_vm1, %v815_v28 }
 0x25f   : > { %v846_v33 = vpop.f32.mrf.mxu3 }
 0x260   : > { %v847_v35 = vadd.f32 %v2979_v34, %v846_v33 }
 0x262   : > { %v851_v38 = vmax.f32 %v847_v35, 0.0 }
 0x267   : > { %v848_v36 = vpop.f32.mrf.mxu3 }
 0x268   : > { %v849_v37 = vadd.f32 %v2979_v34, %v848_v36 }
 0x26a   : > { %v852_v39 = vmax.f32 %v849_v37, 0.0 }
 0x26c   : > { %v853_v40 = vpack.c.bf16 %v852_v39, %v851_v38 }
 0x26e   : > { %928 = vmatmul.bf16.vlgmr.msrb.gmra.mxu2 %v853_v40 }
 0x2f1   : > { %v929_v42 = vpop.f32.mrf.mxu2 }
 0x2f2   : > { %v930_v43 = vadd.f32 %v2980_v41, %v929_v42 }
 0x2f4   : > { %v934_v44 = vadd.f32 %v930_v43, %v813_v26 }
 0x2f6   : > { %v938_v45 = vsel %vm739_vm1, %v934_v44, 0.0  ;;  %v944_v46 = vmul.f32 %v934_v44, %v934_v44 }
 0x2f7   : > { %939 = vadd.xlane.f32.xlu2 %v938_v45  ;;  %v2927_v45 = vld [vmem:[%s3804_s3 + $0x98] sm:$0xff] }
 0x2f8   : > { %v946_v47 = vsel %vm739_vm1, %v944_v46, 0.0  ;;  %1375 = vmatpush.bf16.msrb.mxu0 %v2927_v45  ;;  %v2926_v46 = vld [vmem:[%s3804_s3 + $0x90] sm:$0xff] }
 0x2f9   : > { %v931_v48 = vpop.f32.mrf.mxu2  ;;  %947 = vadd.xlane.f32.xlu0 %v946_v47  ;;  %v2925_v47 = vld [vmem:[%s3804_s3 + $0x88] sm:$0xff]  ;;  %v2914_v45 = vld [vmem:[%s3812_s11 + $0x50] sm:$0xff] }
 0x2fa   : > { %v932_v49 = vadd.f32 %v2980_v41, %v931_v48  ;;  %v2924_v48 = vld [vmem:[%s3804_s3 + $0x80] sm:$0xff] }
 0x2fc   : > { %v935_v50 = vadd.f32 %v932_v49, %v814_v27  ;;  %v2982_v27 = vld [vmem:[%s3817_s16] ss:$0 sm:$0xff]  ;;  %1376 = vmatpush.bf16.msrb.mxu0 %v2926_v46 }
 0x2fe   : > { %v941_v51 = vsel %vm739_vm1, %v935_v50, 0.0  ;;  %v945_v52 = vmul.f32 %v935_v50, %v935_v50 }
 0x2ff   : > { %942 = vadd.xlane.f32.xlu2 %v941_v51 }
 0x300   : > { %v949_v53 = vsel %vm739_vm1, %v945_v52, 0.0  ;;  %1377 = vmatpush.bf16.msrb.mxu0 %v2925_v47  ;;  %v2913_v47 = vld [vmem:[%s3812_s11 + $0x48] sm:$0xff] }
 0x301   : > { %950 = vadd.xlane.f32.xlu1 %v949_v53  ;;  %v2911_v53 = vld [vmem:[%s3810_s9 + $0x18] sm:$0xff] }
 0x302   : > { %1116 = vmatpush.bf16.msrb.mxu1 %v2911_v53  ;;  %v2986_v53 = vld [vmem:[%s3811_s10 + $0x1] ss:$0 sm:$0xff] }
 0x304   : > { %1378 = vmatpush.bf16.msrb.mxu0 %v2924_v48  ;;  %v2912_v48 = vld [vmem:[%s3812_s11 + $0x40] sm:$0xff] }
 0x306   : > { %1117 = vmatpush.bf16.msrb.mxu1 %v2910_v57  ;;  %v1299_v57 = vld [vmem:[%s3805_s4 + $0x1] sm:$0x1] }
 0x36a   : > { %v940_v54 = vpop.xlane.xlu2 %939 }
 0x36b   : > { %v952_v55 = vmul.f32 0.03125, %v940_v54 }
 0x36c   : > { %v948_v56 = vpop.xlane.xlu0 %947 }
 0x36d   : > { %v956_v58 = vmul.f32 %v952_v55, %v952_v55  ;;  %v954_v59 = vmul.f32 0.03125, %v948_v56  ;;  %v960_v18 = vsub.f32 %v934_v44, %v952_v55  ;;  %v2922_v56 = vld [vmem:[%s3804_s3 + $0x70] sm:$0xff] }
 0x36f   : > { %v958_v61 = vsub.f32 %v954_v59, %v956_v58  ;;  %v2921_v59 = vld [vmem:[%s3804_s3 + $0x68] sm:$0xff] }
 0x371   : > { %v962_v62 = vadd.f32 1e-05, %v958_v61 }
 0x372   : > { %v943_v63 = vpop.xlane.xlu2 %942 }
 0x373   : > { %3016 = vrsqrt.f32 %v962_v62  ;;  %v953_v0 = vmul.f32 0.03125, %v943_v63  ;;  %vm970_vm9 = vweird.f32 %v962_v62 }
 0x374   : > { %v951_v1 = vpop.xlane.xlu1 %950 }
 0x375   : > { %v957_v2 = vmul.f32 %v953_v0, %v953_v0  ;;  %v955_v3 = vmul.f32 0.03125, %v951_v1  ;;  %v961_v23 = vsub.f32 %v935_v50, %v953_v0  ;;  %v2923_v50 = vld [vmem:[%s3804_s3 + $0x78] sm:$0xff]  ;;  %v579_v1 = vld [vmem:[%s572_s18] sm:$0x3] }
 0x376   : > { %1379 = vmatpush.bf16.msrb.mxu0 %v2923_v50  ;;  %v2931_v0 = vld [vmem:[%s3804_s3 + $0xb8] sm:$0xff] }
 0x377   : > { %v959_v4 = vsub.f32 %v955_v3, %v957_v2  ;;  %1392 = vmatpush.bf16.msra.mxu1 %v2931_v0  ;;  %v2656_v0 = vld [vmem:[%s3806_s5 + $0x10] sm:$0xff] }
 0x379   : > { %v3017_v5 = vpop.eup %3016  ;;  %v963_v7 = vadd.f32 1e-05, %v959_v4  ;;  %v2920_v4 = vld [vmem:[%s3804_s3 + $0x60] sm:$0xff] }
 0x37a   : > { %v965_v8 = vmul.f32 %v3017_v5, %v962_v62  ;;  %vm971_vm8 = vweird.f32 %v3017_v5  ;;  %1380 = vmatpush.bf16.msrb.mxu0 %v2922_v56 }
 0x37b   : > { %3018 = vrsqrt.f32 %v963_v7  ;;  %vm972_vm10 = vmor %vm970_vm9, %vm971_vm8  ;;  %vm980_vm12 = vweird.f32 %v963_v7 }
 0x37c   : > { %v966_v9 = vmul.f32 %v3017_v5, %v965_v8 }
 0x37e   : > { %v967_v10 = vmul.f32 0.5, %v966_v9  ;;  %1381 = vmatpush.bf16.msrb.mxu0 %v2921_v59 }
 0x380   : > { %v968_v11 = vsub.f32 1.5, %v967_v10 }
 0x381   : > { %v3019_v12 = vpop.eup %3018 }
 0x382   : > { %v969_v13 = vmul.f32 %v3017_v5, %v968_v11  ;;  %v975_v14 = vmul.f32 %v3019_v12, %v963_v7  ;;  %vm981_vm11 = vweird.f32 %v3019_v12  ;;  %v2930_v7 = vld [vmem:[%s3804_s3 + $0xb0] sm:$0xff]  ;;  %1382 = vmatpush.bf16.msrb.mxu0 %v2920_v4 }
 0x383   : > { %vm982_vm13 = vmor %vm980_vm12, %vm981_vm11  ;;  %1393 = vmatpush.bf16.msra.mxu1 %v2930_v7 }
 0x384   : > { %v976_v15 = vmul.f32 %v3019_v12, %v975_v14  ;;  %v973_v16 = vsel %vm972_vm10, %v3017_v5, %v969_v13  ;;  %v1266_v5 = vmul.f32 %v579_v1, %v3193_v6  ;;  %v2929_v14 = vld [vmem:[%s3804_s3 + $0xa8] sm:$0xff]  ;;  %v2657_v1 = vld [vmem:[%s3806_s5 + $0x18] sm:$0xff] }
 0x385   : > { %v984_v20 = vmul.f32 %v973_v16, %v960_v18  ;;  %v2928_v16 = vld [vmem:[%s3804_s3 + $0xa0] sm:$0xff] }
 0x386   : > { %v977_v17 = vmul.f32 0.5, %v976_v15  ;;  %v1268_v9 = vperm.slane %v1266_v5, 0 }
 0x387   : > { %v987_v26 = vmul.f32 %v2981_v21, %v984_v20  ;;  %1394 = vmatpush.bf16.msra.mxu1 %v2929_v14 }
 0x388   : > { %v978_v19 = vsub.f32 1.5, %v977_v17 }
 0x389   : > { %v990_v29 = vadd.f32 %v2982_v27, %v987_v26  ;;  %v2918_v26 = vld [vmem:[%s3812_s11 + $0x70] sm:$0xff] }
 0x38a   : > { %v979_v22 = vmul.f32 %v3019_v12, %v978_v19 }
 0x38b   : > { %1395 = vmatpush.bf16.msra.mxu1 %v2928_v16 }
 0x38c   : > { %v983_v24 = vsel %vm982_vm13, %v3019_v12, %v979_v22  ;;  %v1272_v12 = vpack.c.bf16 %v1268_v9, %v1268_v9  ;;  %v2919_v22 = vld [vmem:[%s3812_s11 + $0x78] sm:$0xff] }
 0x38d   : > { %v985_v25 = vmul.f32 %v983_v24, %v961_v23  ;;  %1194 = vmatpush.bf16.msra.mxu3 %v2919_v22 }
 0x38e   : > { %1383 = vmatmul.bf16.vlgmr.msrb.gmra.mxu0 %v1272_v12 }
 0x38f   : > { %v988_v28 = vmul.f32 %v2981_v21, %v985_v25 }
 0x391   : > { %v991_v30 = vadd.f32 %v2982_v27, %v988_v28  ;;  %1195 = vmatpush.bf16.msra.mxu3 %v2918_v26 }
 0x393   : > { %v992_v31 = vpack.c.bf16 %v991_v30, %v990_v29 }
 0x395   : > { %2521 = vmatmul.msk.bf16.vlgmr.msrb.gmra.mxu3 %vm739_vm1, %v992_v31 }
 0x40b   : > { %v1384_v46 = vpop.f32.mrf.mxu0 }
 0x413   : > { %v1386_v50 = vpop.f32.mrf.mxu0 }
 0x418   : > { %v1024_v33 = vpop.f32.mrf.mxu3 }
 0x419   : > { %v1025_v34 = vadd.f32 %v2983_v32, %v1024_v33 }
 0x41b   : > { %v3301_v35 = vadd.f32 %v1025_v34, %v990_v29  ;;  %v2984_v29 = vld [vmem:[%s3814_s13 + $0x1] ss:$0 sm:$0xff] }
 0x41d   : > { %v1033_v36 = vsel %vm739_vm1, %v3301_v35, 0.0  ;;  %v1039_v37 = vmul.f32 %v3301_v35, %v3301_v35 }
 0x41e   : > { %1034 = vadd.xlane.f32.xlu2 %v1033_v36  ;;  %v2985_v36 = vld [vmem:[%s3815_s14 + $0x1] ss:$0 sm:$0xff] }
 0x41f   : > { %v1041_v38 = vsel %vm739_vm1, %v1039_v37, 0.0 }
 0x420   : > { %v1026_v39 = vpop.f32.mrf.mxu3  ;;  %1042 = vadd.xlane.f32.xlu1 %v1041_v38  ;;  %v2916_v38 = vld [vmem:[%s3812_s11 + $0x60] sm:$0xff] }
 0x421   : > { %v1027_v40 = vadd.f32 %v2983_v32, %v1026_v39  ;;  %v2917_v32 = vld [vmem:[%s3812_s11 + $0x68] sm:$0xff] }
 0x422   : > { %1196 = vmatpush.bf16.msra.mxu3 %v2917_v32 }
 0x423   : > { %v3308_v41 = vadd.f32 %v1027_v40, %v991_v30 }
 0x425   : > { %v1036_v42 = vsel %vm739_vm1, %v3308_v41, 0.0  ;;  %v1040_v43 = vmul.f32 %v3308_v41, %v3308_v41 }
 0x426   : > { %1037 = vadd.xlane.f32.xlu0 %v1036_v42  ;;  %1197 = vmatpush.bf16.msra.mxu3 %v2916_v38  ;;  %v1269_v42 = vperm.slane %v1266_v5, 1 }
 0x427   : > { %v1044_v44 = vsel %vm739_vm1, %v1040_v43, 0.0 }
 0x428   : > { %1045 = vadd.xlane.f32.xlu2 %v1044_v44  ;;  %v1273_v43 = vpack.c.bf16 %v1269_v42, %v1269_v42  ;;  %v2915_v44 = vld [vmem:[%s3812_s11 + $0x58] sm:$0xff]  ;;  %v2941_v42 = vld [vmem:[%s3812_s11 + $0xa8] sm:$0xff] }
 0x42a   : > { %1198 = vmatpush.bf16.msra.mxu3 %v2915_v44 }
 0x42e   : > { %1199 = vmatpush.bf16.msra.mxu3 %v2914_v45  ;;  %v2940_v45 = vld [vmem:[%s3812_s11 + $0xa0] sm:$0xff] }
 0x432   : > { %1200 = vmatpush.bf16.msra.mxu3 %v2913_v47 }
 0x436   : > { %1201 = vmatpush.bf16.msra.mxu3 %v2912_v48 }
 0x491   : > { %v1035_v49 = vpop.xlane.xlu2 %1034 }
 0x492   : > { %v1047_v51 = vmul.f32 0.03125, %v1035_v49  ;;  %v2933_v49 = vld [vmem:[%s3808_s7 + $0x28] sm:$0xff] }
 0x493   : > { %v1043_v52 = vpop.xlane.xlu1 %1042 }
 0x494   : > { %v1051_v54 = vmul.f32 %v1047_v51, %v1047_v51  ;;  %v1049_v55 = vmul.f32 0.03125, %v1043_v52  ;;  %v1055_v25 = vsub.f32 %v3301_v35, %v1047_v51  ;;  %v2932_v51 = vld [vmem:[%s3808_s7 + $0x20] sm:$0xff] }
 0x496   : > { %v1053_v58 = vsub.f32 %v1049_v55, %v1051_v54 }
 0x498   : > { %v1057_v60 = vadd.f32 1e-05, %v1053_v58 }
 0x499   : > { %v1038_v61 = vpop.xlane.xlu0 %1037 }
 0x49a   : > { %3020 = vrsqrt.f32 %v1057_v60  ;;  %v1048_v62 = vmul.f32 0.03125, %v1038_v61  ;;  %vm1065_vm15 = vweird.f32 %v1057_v60 }
 0x49b   : > { %v1046_v63 = vpop.xlane.xlu2 %1045 }
 0x49c   : > { %v1052_v2 = vmul.f32 %v1048_v62, %v1048_v62  ;;  %v1050_v3 = vmul.f32 0.03125, %v1046_v63  ;;  %v1056_v31 = vsub.f32 %v3308_v41, %v1048_v62 }
 0x49e   : > { %v1054_v8 = vsub.f32 %v1050_v3, %v1052_v2 }
 0x4a0   : > { %v3021_v10 = vpop.eup %3020  ;;  %v1058_v11 = vadd.f32 1e-05, %v1054_v8  ;;  %v2988_v8 = vld [vmem:[%s3809_s8 + $0x2] ss:$0 sm:$0xff] }
 0x4a1   : > { %v1060_v13 = vmul.f32 %v3021_v10, %v1057_v60  ;;  %vm1066_vm14 = vweird.f32 %v3021_v10  ;;  %v1385_v60 = vadd.f32 %v1384_v46, %v1299_v57 }
 0x4a2   : > { %3022 = vrsqrt.f32 %v1058_v11  ;;  %vm1067_vm2 = vmor %vm1065_vm15, %vm1066_vm14  ;;  %vm1075_vm4 = vweird.f32 %v1058_v11 }
 0x4a3   : > { %v1061_v6 = vmul.f32 %v3021_v10, %v1060_v13 }
 0x4a5   : > { %v1062_v15 = vmul.f32 0.5, %v1061_v6 }
 0x4a7   : > { %v1063_v17 = vsub.f32 1.5, %v1062_v15 }
 0x4a8   : > { %v3023_v18 = vpop.eup %3022 }
 0x4a9   : > { %v1064_v19 = vmul.f32 %v3021_v10, %v1063_v17  ;;  %v1070_v20 = vmul.f32 %v3023_v18, %v1058_v11  ;;  %vm1076_vm3 = vweird.f32 %v3023_v18 }
 0x4aa   : > { %vm1077_vm5 = vmor %vm1075_vm4, %vm1076_vm3 }
 0x4ab   : > { %v1071_v21 = vmul.f32 %v3023_v18, %v1070_v20  ;;  %v1068_v23 = vsel %vm1067_vm2, %v3021_v10, %v1064_v19 }
 0x4ac   : > { %v1079_v28 = vmul.f32 %v1068_v23, %v1055_v25  ;;  %v2935_v23 = vld [vmem:[%s3810_s9 + $0x28] sm:$0xff] }
 0x4ad   : > { %v1072_v24 = vmul.f32 0.5, %v1071_v21 }
 0x4ae   : > { %v1082_v35 = vmul.f32 %v2984_v29, %v1079_v28 }
 0x4af   : > { %v1073_v27 = vsub.f32 1.5, %v1072_v24 }
 0x4b0   : > { %v3382_v39 = vadd.f32 %v2985_v36, %v1082_v35 }
 0x4b1   : > { %v1074_v30 = vmul.f32 %v3023_v18, %v1073_v27  ;;  %v2934_v27 = vld [vmem:[%s3810_s9 + $0x20] sm:$0xff] }
 0x4b3   : > { %v1078_v33 = vsel %vm1077_vm5, %v3023_v18, %v1074_v30 }
 0x4b4   : > { %v1080_v34 = vmul.f32 %v1078_v33, %v1056_v31 }
 0x4b6   : > { %v1083_v37 = vmul.f32 %v2984_v29, %v1080_v34  ;;  %v2943_v34 = vld [vmem:[%s3812_s11 + $0xb8] sm:$0xff] }
 0x4b7   : > { %1609 = vmatpush.bf16.msra.mxu2 %v2943_v34 }
 0x4b8   : > { %v3384_v40 = vadd.f32 %v2985_v36, %v1083_v37  ;;  %v2942_v36 = vld [vmem:[%s3812_s11 + $0xb0] sm:$0xff] }
 0x4ba   : > { %v1087_v41 = vpack.c.bf16 %v3384_v40, %v3382_v39 }
 0x4bb   : > { %1610 = vmatpush.bf16.msra.mxu2 %v2942_v36 }
 0x4bc   : > { %2534 = vmatmul.msk.bf16.vlgmr.msrb.gmra.mxu1 %vm739_vm1, %v1087_v41 }
 0x4bd   : > { %1436 = vmatpush.bf16.msrb.mxu1 %v2933_v49 }
 0x4bf   : > { %1611 = vmatpush.bf16.msra.mxu2 %v2941_v42 }
 0x4c1   : > { %1437 = vmatpush.bf16.msrb.mxu1 %v2932_v51 }
 0x4c3   : > { %1612 = vmatpush.bf16.msra.mxu2 %v2940_v45 }
 0x4cc   : > { %2655 = vmatmul.msk.bf16.vlgmr.msra.gmra.mxu1 %vm685_vm0, %v1273_v43 }
 0x4cd   : > { %1531 = vmatpush.bf16.msra.mxu1 %v2935_v23 }
 0x4d1   : > { %1532 = vmatpush.bf16.msra.mxu1 %v2934_v27 }
 0x539   : > { %v1119_v52 = vpop.f32.mrf.mxu1 }
 0x53a   : > { %v1120_v54 = vadd.f32 %v2986_v53, %v1119_v52 }
 0x53c   : > { %v1124_v58 = vmax.f32 %v1120_v54, 0.0 }
 0x541   : > { %v1121_v55 = vpop.f32.mrf.mxu1 }
 0x542   : > { %v1122_v56 = vadd.f32 %v2986_v53, %v1121_v55  ;;  %v2989_v55 = vld [vmem:[%s3814_s13 + $0x2] ss:$0 sm:$0xff] }
 0x544   : > { %v1125_v59 = vmax.f32 %v1122_v56, 0.0 }
 0x546   : > { %v1126_v61 = vpack.c.bf16 %v1125_v59, %v1124_v58 }
 0x548   : > { %1202 = vmatmul.bf16.vlgmr.msra.gmra.mxu3 %v1126_v61 }
 0x549   : > { %v1397_v62 = vpop.f32.mrf.mxu1 }
 0x54a   : > { %v1398_v63 = vadd.f32 %v1397_v62, %v1385_v60  ;;  %v2990_v62 = vld [vmem:[%s3815_s14 + $0x2] ss:$0 sm:$0xff] }
 0x54c   : > { %v1404_v2 = vperm.slane %v1398_v63, 0 }
 0x54e   : > { %v1405_v3 = vadd.f32 %v2656_v0, %v1404_v2  ;;  %v1406_v4 = vadd.f32 %v2657_v1, %v1404_v2 }
 0x550   : > { %v1407_v5 = vpack.c.bf16 %v1406_v4, %v1405_v3 }
 0x551   : > { %v1399_v7 = vpop.f32.mrf.mxu1 }
 0x552   : > { %2670 = vmatmul.msk.bf16.vlgmr.msrb.gmra.mxu1 %vm739_vm1, %v1407_v5  ;;  %v2937_v5 = vld [vmem:[%s3812_s11 + $0x88] sm:$0xff]  ;;  %v2936_v7 = vld [vmem:[%s3812_s11 + $0x80] sm:$0xff] }
 0x5cf   : > { %v1439_v9 = vpop.f32.mrf.mxu1 }
 0x5d0   : > { %v1440_v10 = vadd.f32 %v2988_v8, %v1439_v9  ;;  %v2991_v9 = vld [vmem:[%s3811_s10 + $0x2] ss:$0 sm:$0xff] }
 0x5d2   : > { %v1444_v11 = vadd.f32 %v1440_v10, %v1405_v3  ;;  %v2939_v3 = vld [vmem:[%s3812_s11 + $0x98] sm:$0xff] }
 0x5d3   : > { %1613 = vmatpush.bf16.msra.mxu2 %v2939_v3 }
 0x5d4   : > { %v1448_v12 = vsel %vm739_vm1, %v1444_v11, 0.0  ;;  %v1454_v13 = vmul.f32 %v1444_v11, %v1444_v11 }
 0x5d5   : > { %1449 = vadd.xlane.f32.xlu0 %v1448_v12 }
 0x5d6   : > { %v1456_v14 = vsel %vm739_vm1, %v1454_v13, 0.0 }
 0x5d7   : > { %v1441_v6 = vpop.f32.mrf.mxu1  ;;  %1457 = vadd.xlane.f32.xlu2 %v1456_v14 }
 0x5d8   : > { %v1442_v15 = vadd.f32 %v2988_v8, %v1441_v6 }
 0x5da   : > { %v1445_v16 = vadd.f32 %v1442_v15, %v1406_v4  ;;  %v2938_v4 = vld [vmem:[%s3812_s11 + $0x90] sm:$0xff]  ;;  %v1203_v15 = vpop.f32.mrf.mxu3 }
 0x5db   : > { %1614 = vmatpush.bf16.msra.mxu2 %v2938_v4  ;;  %v2956_v4 = vld [vmem:[%s3808_s7 + $0x40] sm:$0xff] }
 0x5dc   : > { %v1451_v17 = vsel %vm739_vm1, %v1445_v16, 0.0  ;;  %v1455_v18 = vmul.f32 %v1445_v16, %v1445_v16 }
 0x5dd   : > { %1452 = vadd.xlane.f32.xlu1 %v1451_v17 }
 0x5de   : > { %v1459_v19 = vsel %vm739_vm1, %v1455_v18, 0.0 }
 0x5df   : > { %1460 = vadd.xlane.f32.xlu0 %v1459_v19  ;;  %1615 = vmatpush.bf16.msra.mxu2 %v2937_v5 }
 0x5e3   : > { %1616 = vmatpush.bf16.msra.mxu2 %v2936_v7 }
 0x648   : > { %v1450_v20 = vpop.xlane.xlu0 %1449 }
 0x649   : > { %v1462_v21 = vmul.f32 0.03125, %v1450_v20  ;;  %v1205_v20 = vpop.f32.mrf.mxu3 }
 0x64a   : > { %v1458_v22 = vpop.xlane.xlu2 %1457 }
 0x64b   : > { %v1466_v24 = vmul.f32 %v1462_v21, %v1462_v21  ;;  %v1464_v25 = vmul.f32 0.03125, %v1458_v22  ;;  %v1470_v53 = vsub.f32 %v1444_v11, %v1462_v21  ;;  %v2987_v21 = vld [vmem:[%s3813_s12 + $0x1] ss:$0 sm:$0xff] }
 0x64d   : > { %v1468_v26 = vsub.f32 %v1464_v25, %v1466_v24  ;;  %v1206_v24 = vadd.f32 %v2987_v21, %v1205_v20 }
 0x64f   : > { %v1472_v28 = vadd.f32 1e-05, %v1468_v26 }
 0x650   : > { %v1453_v29 = vpop.xlane.xlu1 %1452 }
 0x651   : > { %3024 = vrsqrt.f32 %v1472_v28  ;;  %v1463_v30 = vmul.f32 0.03125, %v1453_v29  ;;  %vm1480_vm6 = vweird.f32 %v1472_v28  ;;  %v3482_v29 = vadd.f32 %v1206_v24, %v3384_v40  ;;  %v2993_v24 = vld [vmem:[%s3816_s15 + $0x2] ss:$0 sm:$0xff] }
 0x652   : > { %v1461_v31 = vpop.xlane.xlu0 %1460 }
 0x653   : > { %v1467_v32 = vmul.f32 %v1463_v30, %v1463_v30  ;;  %v1465_v33 = vmul.f32 0.03125, %v1461_v31  ;;  %v1471_v58 = vsub.f32 %v1445_v16, %v1463_v30  ;;  %v2992_v16 = vld [vmem:[%s3813_s12 + $0x2] ss:$0 sm:$0xff] }
 0x655   : > { %v1469_v35 = vsub.f32 %v1465_v33, %v1467_v32 }
 0x657   : > { %v3025_v37 = vpop.eup %3024  ;;  %v1473_v38 = vadd.f32 1e-05, %v1469_v35  ;;  %v1215_v35 = vsel %vm739_vm1, %v3482_v29, 0.0 }
 0x658   : > { %v1475_v41 = vmul.f32 %v3025_v37, %v1472_v28  ;;  %vm1481_vm0 = vweird.f32 %v3025_v37  ;;  %v1204_v28 = vadd.f32 %v2987_v21, %v1203_v15 }
 0x659   : > { %3026 = vrsqrt.f32 %v1473_v38  ;;  %vm1482_vm7 = vmor %vm1480_vm6, %vm1481_vm0  ;;  %vm1490_vm9 = vweird.f32 %v1473_v38 }
 0x65a   : > { %v1476_v43 = vmul.f32 %v3025_v37, %v1475_v41  ;;  %v3491_v33 = vadd.f32 %v1204_v28, %v3382_v39  ;;  %v1219_v39 = vmul.f32 %v3482_v29, %v3482_v29 }
 0x65c   : > { %v1477_v44 = vmul.f32 0.5, %v1476_v43  ;;  %v1218_v40 = vmul.f32 %v3491_v33, %v3491_v33  ;;  %v1212_v36 = vsel %vm739_vm1, %v3491_v33, 0.0 }
 0x65e   : > { %v1478_v46 = vsub.f32 1.5, %v1477_v44  ;;  %v2945_v44 = vld [vmem:[%s3808_s7 + $0x38] sm:$0xff] }
 0x65f   : > { %v3027_v47 = vpop.eup %3026  ;;  %1710 = vmatpush.bf16.msrb.mxu3 %v2945_v44 }
 0x660   : > { %v1479_v48 = vmul.f32 %v3025_v37, %v1478_v46  ;;  %v1485_v49 = vmul.f32 %v3027_v47, %v1473_v38  ;;  %vm1491_vm8 = vweird.f32 %v3027_v47  ;;  %v1223_v38 = vsel %vm739_vm1, %v1219_v39, 0.0 }
 0x661   : > { %vm1492_vm10 = vmor %vm1490_vm9, %vm1491_vm8 }
 0x662   : > { %v1486_v50 = vmul.f32 %v3027_v47, %v1485_v49  ;;  %v1483_v51 = vsel %vm1482_vm7, %v3025_v37, %v1479_v48  ;;  %v1220_v37 = vsel %vm739_vm1, %v1218_v40, 0.0  ;;  %v2944_v48 = vld [vmem:[%s3808_s7 + $0x30] sm:$0xff] }
 0x663   : > { %v1494_v56 = vmul.f32 %v1483_v51, %v1470_v53  ;;  %1711 = vmatpush.bf16.msrb.mxu3 %v2944_v48 }
 0x664   : > { %v1487_v52 = vmul.f32 0.5, %v1486_v50 }
 0x665   : > { %v1497_v60 = vmul.f32 %v2989_v55, %v1494_v56 }
 0x666   : > { %v1488_v54 = vsub.f32 1.5, %v1487_v52 }
 0x667   : > { %v1500_v0 = vadd.f32 %v2990_v62, %v1497_v60 }
 0x668   : > { %v1489_v57 = vmul.f32 %v3027_v47, %v1488_v54 }
 0x66a   : > { %v1493_v59 = vsel %vm1492_vm10, %v3027_v47, %v1489_v57 }
 0x66b   : > { %v1495_v61 = vmul.f32 %v1493_v59, %v1471_v58 }
 0x66d   : > { %v1498_v63 = vmul.f32 %v2989_v55, %v1495_v61 }
 0x66f   : > { %v1501_v1 = vadd.f32 %v2990_v62, %v1498_v63 }
 0x671   : > { %v1502_v2 = vpack.c.bf16 %v1501_v1, %v1500_v0 }
 0x673   : > { %2683 = vmatmul.msk.bf16.vlgmr.msra.gmra.mxu1 %vm739_vm1, %v1502_v2 }
 0x6f0   : > { %v1534_v8 = vpop.f32.mrf.mxu1 }
 0x6f1   : > { %v1535_v10 = vadd.f32 %v2991_v9, %v1534_v8 }
 0x6f3   : > { %v1539_v13 = vmax.f32 %v1535_v10, 0.0 }
 0x6f8   : > { %v1536_v11 = vpop.f32.mrf.mxu1 }
 0x6f9   : > { %v1537_v12 = vadd.f32 %v2991_v9, %v1536_v11 }
 0x6fb   : > { %v1540_v14 = vmax.f32 %v1537_v12, 0.0 }
 0x6fd   : > { %v1541_v6 = vpack.c.bf16 %v1540_v14, %v1539_v13 }
 0x6ff   : > { %1617 = vmatmul.bf16.vlgmr.msra.gmra.mxu2 %v1541_v6 }
 0x782   : > { %v1618_v17 = vpop.f32.mrf.mxu2 }
 0x783   : > { %v1619_v18 = vadd.f32 %v2992_v16, %v1618_v17 }
 0x785   : > { %v3471_v19 = vadd.f32 %v1619_v18, %v1500_v0  ;;  %v2957_v0 = vld [vmem:[%s3808_s7 + $0x48] sm:$0xff] }
 0x786   : > { %1992 = vmatpush.bf16.msra.mxu3 %v2957_v0 }
 0x787   : > { %v1627_v22 = vsel %vm739_vm1, %v3471_v19, 0.0  ;;  %v1633_v23 = vmul.f32 %v3471_v19, %v3471_v19 }
 0x788   : > { %1628 = vadd.xlane.f32.xlu1 %v1627_v22 }
 0x789   : > { %v1635_v25 = vsel %vm739_vm1, %v1633_v23, 0.0 }
 0x78a   : > { %v1620_v26 = vpop.f32.mrf.mxu2  ;;  %1636 = vadd.xlane.f32.xlu0 %v1635_v25  ;;  %1993 = vmatpush.bf16.msra.mxu3 %v2956_v4 }
 0x78b   : > { %v1621_v27 = vadd.f32 %v2992_v16, %v1620_v26 }
 0x78d   : > { %v3484_v30 = vadd.f32 %v1621_v27, %v1501_v1 }
 0x78f   : > { %v1630_v31 = vsel %vm739_vm1, %v3484_v30, 0.0  ;;  %v1634_v32 = vmul.f32 %v3484_v30, %v3484_v30 }
 0x790   : > { %1631 = vadd.xlane.f32.xlu2 %v1630_v31 }
 0x791   : > { %v1638_v34 = vsel %vm739_vm1, %v1634_v32, 0.0 }
 0x792   : > { %1639 = vadd.xlane.f32.xlu1 %v1638_v34  ;;  %1216 = vadd.xlane.f32.xlu0 %v1215_v35  ;;  %v2995_v35 = vld [vmem:[%s3817_s16 + $0x2] ss:$0 sm:$0xff] }
 0x798   : > { %1213 = vadd.xlane.f32.xlu2 %v1212_v36 }
 0x79a   : > { %1221 = vadd.xlane.f32.xlu1 %v1220_v37 }
 0x7a0   : > { %1224 = vadd.xlane.f32.xlu2 %v1223_v38 }
 0x7fb   : > { %v1629_v41 = vpop.xlane.xlu1 %1628 }
 0x7fc   : > { %v1641_v42 = vmul.f32 0.03125, %v1629_v41 }
 0x7fd   : > { %v1637_v43 = vpop.xlane.xlu0 %1636 }
 0x7fe   : > { %v1645_v45 = vmul.f32 %v1641_v42, %v1641_v42  ;;  %v1643_v46 = vmul.f32 0.03125, %v1637_v43  ;;  %v1649_v20 = vsub.f32 %v3471_v19, %v1641_v42 }
 0x800   : > { %v1647_v47 = vsub.f32 %v1643_v46, %v1645_v45 }
 0x802   : > { %v1651_v49 = vadd.f32 1e-05, %v1647_v47 }
 0x803   : > { %v1632_v50 = vpop.xlane.xlu2 %1631 }
 0x804   : > { %3028 = vrsqrt.f32 %v1651_v49  ;;  %v1642_v51 = vmul.f32 0.03125, %v1632_v50  ;;  %vm1659_vm12 = vweird.f32 %v1651_v49 }
 0x805   : > { %v1640_v52 = vpop.xlane.xlu1 %1639  ;;  %v1217_v62 = vpop.xlane.xlu0 %1216 }
 0x806   : > { %v1646_v53 = vmul.f32 %v1642_v51, %v1642_v51  ;;  %v1644_v54 = vmul.f32 0.03125, %v1640_v52  ;;  %v3520_v5 = vmul.f32 0.03125, %v1217_v62  ;;  %v1650_v28 = vsub.f32 %v3484_v30, %v1642_v51  ;;  %v2994_v51 = vld [vmem:[%s3816_s15 + $0x1] ss:$0 sm:$0xff] }
 0x808   : > { %v1648_v55 = vsub.f32 %v1644_v54, %v1646_v53  ;;  %v1231_v14 = vmul.f32 %v3520_v5, %v3520_v5  ;;  %v1235_v50 = vsub.f32 %v3482_v29, %v3520_v5  ;;  %v2997_v29 = vld [vmem:[%s3807_s6] ss:$0 sm:$0xff] }
 0x80a   : > { %v3029_v56 = vpop.eup %3028  ;;  %v1652_v57 = vadd.f32 1e-05, %v1648_v55 }
 0x80b   : > { %v1654_v58 = vmul.f32 %v3029_v56, %v1651_v49  ;;  %v1214_v59 = vpop.xlane.xlu2 %1213  ;;  %vm1660_vm11 = vweird.f32 %v3029_v56 }
 0x80c   : > { %3030 = vrsqrt.f32 %v1652_v57  ;;  %v3510_v60 = vmul.f32 0.03125, %v1214_v59  ;;  %vm1661_vm13 = vmor %vm1659_vm12, %vm1660_vm11  ;;  %vm1669_vm15 = vweird.f32 %v1652_v57 }
 0x80d   : > { %v1655_v61 = vmul.f32 %v3029_v56, %v1654_v58  ;;  %v1222_v63 = vpop.xlane.xlu1 %1221 }
 0x80e   : > { %v1230_v1 = vmul.f32 %v3510_v60, %v3510_v60  ;;  %v1228_v2 = vmul.f32 0.03125, %v1222_v63  ;;  %v1234_v48 = vsub.f32 %v3491_v33, %v3510_v60  ;;  %v1960_v60 = vpack.c.bf16 %v2997_v29, %v2997_v29 }
 0x80f   : > { %v1656_v3 = vmul.f32 0.5, %v1655_v61  ;;  %v2998_v61 = vld [vmem:[%s3809_s8 + $0x3] ss:$0 sm:$0xff] }
 0x810   : > { %v1232_v7 = vsub.f32 %v1228_v2, %v1230_v1 }
 0x811   : > { %v1657_v8 = vsub.f32 1.5, %v1656_v3 }
 0x812   : > { %v3031_v9 = vpop.eup %3030  ;;  %v1236_v10 = vadd.f32 1e-05, %v1232_v7 }
 0x813   : > { %v1658_v11 = vmul.f32 %v3029_v56, %v1657_v8  ;;  %v1664_v12 = vmul.f32 %v3031_v9, %v1652_v57  ;;  %v1225_v13 = vpop.xlane.xlu2 %1224  ;;  %vm1670_vm14 = vweird.f32 %v3031_v9  ;;  %v2996_v57 = vld [vmem:[%s3817_s16 + $0x1] ss:$0 sm:$0xff] }
 0x814   : > { %3032 = vrsqrt.f32 %v1236_v10  ;;  %v1229_v6 = vmul.f32 0.03125, %v1225_v13  ;;  %vm1671_vm2 = vmor %vm1669_vm15, %vm1670_vm14  ;;  %vm1244_vm4 = vweird.f32 %v1236_v10 }
 0x815   : > { %v1665_v15 = vmul.f32 %v3031_v9, %v1664_v12  ;;  %v1662_v17 = vsel %vm1661_vm13, %v3029_v56, %v1658_v11 }
 0x816   : > { %v1233_v16 = vsub.f32 %v1229_v6, %v1231_v14  ;;  %v1673_v25 = vmul.f32 %v1662_v17, %v1649_v20 }
 0x817   : > { %v1666_v18 = vmul.f32 0.5, %v1665_v15 }
 0x818   : > { %v1237_v21 = vadd.f32 1e-05, %v1233_v16  ;;  %v1676_v34 = vmul.f32 %v2993_v24, %v1673_v25 }
 0x819   : > { %v1667_v22 = vsub.f32 1.5, %v1666_v18 }
 0x81a   : > { %v3033_v23 = vpop.eup %3032  ;;  %3034 = vrsqrt.f32 %v1237_v21  ;;  %v1679_v41 = vadd.f32 %v2995_v35, %v1676_v34  ;;  %vm1254_vm6 = vweird.f32 %v1237_v21 }
 0x81b   : > { %v1668_v26 = vmul.f32 %v3031_v9, %v1667_v22  ;;  %v1239_v27 = vmul.f32 %v3033_v23, %v1236_v10  ;;  %vm1245_vm3 = vweird.f32 %v3033_v23  ;;  %v2999_v10 = vld [vmem:[%s3809_s8 + $0x4] ss:$0 sm:$0xff] }
 0x81c   : > { %vm1246_vm5 = vmor %vm1244_vm4, %vm1245_vm3 }
 0x81d   : > { %v1672_v31 = vsel %vm1671_vm2, %v3031_v9, %v1668_v26  ;;  %v1240_v32 = vmul.f32 %v3033_v23, %v1239_v27 }
 0x81e   : > { %v1674_v19 = vmul.f32 %v1672_v31, %v1650_v28 }
 0x81f   : > { %v1241_v40 = vmul.f32 0.5, %v1240_v32 }
 0x820   : > { %v3035_v36 = vpop.eup %3034  ;;  %v1677_v37 = vmul.f32 %v2993_v24, %v1674_v19 }
 0x821   : > { %v1242_v39 = vsub.f32 1.5, %v1241_v40  ;;  %v1249_v38 = vmul.f32 %v3035_v36, %v1237_v21  ;;  %vm1255_vm0 = vweird.f32 %v3035_v36 }
 0x822   : > { %v1680_v42 = vadd.f32 %v2995_v35, %v1677_v37  ;;  %vm1256_vm7 = vmor %vm1254_vm6, %vm1255_vm0 }
 0x823   : > { %v1243_v43 = vmul.f32 %v3033_v23, %v1242_v39  ;;  %v1250_v44 = vmul.f32 %v3035_v36, %v1249_v38 }
 0x824   : > { %v1681_v30 = vpack.c.bf16 %v1680_v42, %v1679_v41 }
 0x825   : > { %v1251_v45 = vmul.f32 0.5, %v1250_v44  ;;  %v1247_v46 = vsel %vm1246_vm5, %v3033_v23, %v1243_v43 }
 0x826   : > { %2744 = vmatmul.msk.bf16.vlgmr.msrb.gmra.mxu3 %vm739_vm1, %v1681_v30  ;;  %v1258_v52 = vmul.f32 %v1247_v46, %v1234_v48  ;;  %v2946_v30 = vld [vmem:[%s3810_s9 + $0x30] sm:$0xff] }
 0x827   : > { %v1252_v47 = vsub.f32 1.5, %v1251_v45 }
 0x828   : > { %v1261_v55 = vmul.f32 %v2994_v51, %v1258_v52 }
 0x829   : > { %v1253_v49 = vmul.f32 %v3035_v36, %v1252_v47 }
 0x82a   : > { %v1264_v58 = vadd.f32 %v2996_v57, %v1261_v55 }
 0x82b   : > { %v1257_v53 = vsel %vm1256_vm7, %v3035_v36, %v1253_v49 }
 0x82c   : > { %v1259_v54 = vmul.f32 %v1257_v53, %v1235_v50 }
 0x82e   : > { %v1262_v56 = vmul.f32 %v2994_v51, %v1259_v54 }
 0x830   : > { %v1265_v33 = vadd.f32 %v2996_v57, %v1262_v56 }
 0x832   : > { %v1959_v59 = vpack.c.bf16 %v1265_v33, %v1264_v58 }
 0x836   : > { %2818 = vmatmul.msk.bf16.vlgmr.msra.gmra.mxu3 %vm739_vm1, %v1959_v59 }
 0x846   : > { %2819 = vmatmul.msk.bf16.gmra.mxu3 %vm739_vm1, %v1960_v60 }
 0x8a9   : > { %v1713_v62 = vpop.f32.mrf.mxu3 }
 0x8aa   : > { %v1714_v63 = vadd.f32 %v2998_v61, %v1713_v62 }
 0x8ac   : > { %v3551_v0 = vadd.f32 %v1714_v63, %v1679_v41  ;;  %v2947_v41 = vld [vmem:[%s3810_s9 + $0x38] sm:$0xff]  ;;  %v2958_v63 = vld [vmem:[%s3810_s9 + $0x40] sm:$0xff] }
 0x8ad   : > { %1805 = vmatpush.bf16.msra.mxu0 %v2947_v41 }
 0x8ae   : > { %v1722_v1 = vsel %vm739_vm1, %v3551_v0, 0.0  ;;  %v1728_v2 = vmul.f32 %v3551_v0, %v3551_v0 }
 0x8af   : > { %1723 = vadd.xlane.f32.xlu0 %v1722_v1 }
 0x8b0   : > { %v1730_v3 = vsel %vm739_vm1, %v1728_v2, 0.0 }
 0x8b1   : > { %v1715_v4 = vpop.f32.mrf.mxu3  ;;  %1731 = vadd.xlane.f32.xlu2 %v1730_v3  ;;  %1806 = vmatpush.bf16.msra.mxu0 %v2946_v30 }
 0x8b2   : > { %v1716_v5 = vadd.f32 %v2998_v61, %v1715_v4 }
 0x8b4   : > { %v3558_v7 = vadd.f32 %v1716_v5, %v1680_v42 }
 0x8b6   : > { %v1725_v8 = vsel %vm739_vm1, %v3558_v7, 0.0  ;;  %v1729_v9 = vmul.f32 %v3558_v7, %v3558_v7 }
 0x8b7   : > { %1726 = vadd.xlane.f32.xlu1 %v1725_v8 }
 0x8b8   : > { %v1733_v11 = vsel %vm739_vm1, %v1729_v9, 0.0 }
 0x8b9   : > { %1734 = vadd.xlane.f32.xlu0 %v1733_v11  ;;  %v1995_v12 = vpop.f32.mrf.mxu3 }
 0x8ba   : > { %v1996_v13 = vadd.f32 %v2999_v10, %v1995_v12 }
 0x8bc   : > { %v3568_v14 = vadd.f32 %v1996_v13, %v1264_v58  ;;  %v2959_v58 = vld [vmem:[%s3810_s9 + $0x48] sm:$0xff] }
 0x8bd   : > { %2150 = vmatpush.bf16.msrb.mxu0 %v2959_v58 }
 0x8be   : > { %v2011_v6 = vsel %vm739_vm1, %v3568_v14, 0.0  ;;  %v2023_v15 = vmul.f32 %v3568_v14, %v3568_v14 }
 0x8bf   : > { %2012 = vadd.xlane.f32.xlu1 %v2011_v6 }
 0x8c0   : > { %v2027_v16 = vsel %vm739_vm1, %v2023_v15, 0.0 }
 0x8c1   : > { %v1997_v17 = vpop.f32.mrf.mxu3  ;;  %2028 = vadd.xlane.f32.xlu0 %v2027_v16  ;;  %2151 = vmatpush.bf16.msrb.mxu0 %v2958_v63 }
 0x8c2   : > { %v1998_v18 = vadd.f32 %v2999_v10, %v1997_v17 }
 0x8c4   : > { %v3575_v20 = vadd.f32 %v1998_v18, %v1265_v33 }
 0x8c6   : > { %v2014_v21 = vsel %vm739_vm1, %v3575_v20, 0.0  ;;  %v2024_v22 = vmul.f32 %v3575_v20, %v3575_v20 }
 0x8c7   : > { %2015 = vadd.xlane.f32.xlu2 %v2014_v21  ;;  %v3000_v21 = vld [vmem:[%s3814_s13 + $0x3] ss:$0 sm:$0xff] }
 0x8c8   : > { %v2030_v23 = vsel %vm739_vm1, %v2024_v22, 0.0 }
 0x8c9   : > { %v2000_v24 = vpop.f32.mrf.mxu3  ;;  %2031 = vadd.xlane.f32.xlu1 %v2030_v23 }
 0x8ca   : > { %v2001_v25 = vadd.f32 %v2999_v10, %v2000_v24 }
 0x8cc   : > { %v3582_v26 = vadd.f32 %v2997_v29, %v2001_v25 }
 0x8ce   : > { %v2017_v27 = vsel %vm739_vm1, %v3582_v26, 0.0  ;;  %v2025_v28 = vmul.f32 %v3582_v26, %v3582_v26 }
 0x8cf   : > { %2018 = vadd.xlane.f32.xlu2 %v2017_v27 }
 0x8d0   : > { %v2033_v31 = vsel %vm739_vm1, %v2025_v28, 0.0 }
 0x8d1   : > { %v2002_v32 = vpop.f32.mrf.mxu3  ;;  %2034 = vadd.xlane.f32.xlu1 %v2033_v31 }
 0x8d2   : > { %v2003_v34 = vadd.f32 %v2999_v10, %v2002_v32 }
 0x8d4   : > { %v3589_v19 = vadd.f32 %v2997_v29, %v2003_v34 }
 0x8d6   : > { %v2020_v35 = vsel %vm739_vm1, %v3589_v19, 0.0  ;;  %v2026_v40 = vmul.f32 %v3589_v19, %v3589_v19 }
 0x8d7   : > { %2021 = vadd.xlane.f32.xlu0 %v2020_v35 }
 0x8d8   : > { %v2036_v36 = vsel %vm739_vm1, %v2026_v40, 0.0 }
 0x8d9   : > { %2037 = vadd.xlane.f32.xlu2 %v2036_v36 }
 0x922   : > { %v1724_v37 = vpop.xlane.xlu0 %1723 }
 0x923   : > { %v1736_v39 = vmul.f32 0.03125, %v1724_v37 }
 0x924   : > { %v1732_v38 = vpop.xlane.xlu2 %1731 }
 0x925   : > { %v1740_v42 = vmul.f32 %v1736_v39, %v1736_v39  ;;  %v1738_v43 = vmul.f32 0.03125, %v1732_v38  ;;  %v1744_v15 = vsub.f32 %v3551_v0, %v1736_v39  ;;  %v3002_v39 = vld [vmem:[%s3815_s14 + $0x3] ss:$0 sm:$0xff] }
 0x927   : > { %v1742_v44 = vsub.f32 %v1738_v43, %v1740_v42 }
 0x929   : > { %v1746_v45 = vadd.f32 1e-05, %v1742_v44 }
 0x92a   : > { %v1727_v46 = vpop.xlane.xlu1 %1726 }
 0x92b   : > { %3036 = vrsqrt.f32 %v1746_v45  ;;  %v1737_v47 = vmul.f32 0.03125, %v1727_v46  ;;  %vm1754_vm9 = vweird.f32 %v1746_v45 }
 0x92c   : > { %v1735_v48 = vpop.xlane.xlu0 %1734 }
 0x92d   : > { %v1741_v49 = vmul.f32 %v1737_v47, %v1737_v47  ;;  %v1739_v50 = vmul.f32 0.03125, %v1735_v48  ;;  %v1745_v28 = vsub.f32 %v3558_v7, %v1737_v47 }
 0x92f   : > { %v1743_v51 = vsub.f32 %v1739_v50, %v1741_v49 }
 0x931   : > { %v3037_v52 = vpop.eup %3036  ;;  %v1747_v53 = vadd.f32 1e-05, %v1743_v51 }
 0x932   : > { %v1749_v54 = vmul.f32 %v3037_v52, %v1746_v45  ;;  %v2013_v55 = vpop.xlane.xlu1 %2012  ;;  %vm1755_vm8 = vweird.f32 %v3037_v52 }
 0x933   : > { %3038 = vrsqrt.f32 %v1747_v53  ;;  %v3602_v56 = vmul.f32 0.03125, %v2013_v55  ;;  %vm1756_vm10 = vmor %vm1754_vm9, %vm1755_vm8  ;;  %vm1764_vm12 = vweird.f32 %v1747_v53  ;;  %v2955_v55 = vld [vmem:[%s3812_s11 + $0xf8] sm:$0xff] }
 0x934   : > { %v1750_v57 = vmul.f32 %v3037_v52, %v1749_v54  ;;  %v2029_v33 = vpop.xlane.xlu0 %2028  ;;  %1883 = vmatpush.bf16.msrb.mxu1 %v2955_v55 }
 0x935   : > { %v2047_v59 = vmul.f32 %v3602_v56, %v3602_v56  ;;  %v2043_v29 = vmul.f32 0.03125, %v2029_v33  ;;  %v2055_v58 = vsub.f32 %v3568_v14, %v3602_v56  ;;  %v2953_v56 = vld [vmem:[%s3812_s11 + $0xe8] sm:$0xff] }
 0x936   : > { %v1751_v60 = vmul.f32 0.5, %v1750_v57 }
 0x937   : > { %v2051_v61 = vsub.f32 %v2043_v29, %v2047_v59  ;;  %v2954_v29 = vld [vmem:[%s3812_s11 + $0xf0] sm:$0xff] }
 0x938   : > { %v1752_v62 = vsub.f32 1.5, %v1751_v60  ;;  %1884 = vmatpush.bf16.msrb.mxu1 %v2954_v29 }
 0x939   : > { %v3039_v1 = vpop.eup %3038  ;;  %v2059_v2 = vadd.f32 1e-05, %v2051_v61 }
 0x93a   : > { %v1753_v3 = vmul.f32 %v3037_v52, %v1752_v62  ;;  %v1759_v4 = vmul.f32 %v3039_v1, %v1747_v53  ;;  %v2016_v5 = vpop.xlane.xlu2 %2015  ;;  %vm1765_vm11 = vweird.f32 %v3039_v1  ;;  %v3001_v62 = vld [vmem:[%s3814_s13 + $0x4] ss:$0 sm:$0xff] }
 0x93b   : > { %3040 = vrsqrt.f32 %v2059_v2  ;;  %v3612_v8 = vmul.f32 0.03125, %v2016_v5  ;;  %vm1766_vm13 = vmor %vm1764_vm12, %vm1765_vm11  ;;  %vm2069_vm15 = vweird.f32 %v2059_v2 }
 0x93c   : > { %v1760_v9 = vmul.f32 %v3039_v1, %v1759_v4  ;;  %v2032_v10 = vpop.xlane.xlu1 %2031  ;;  %v1757_v13 = vsel %vm1756_vm10, %v3037_v52, %v1753_v3  ;;  %1885 = vmatpush.bf16.msrb.mxu1 %v2953_v56 }
 0x93d   : > { %v2048_v11 = vmul.f32 %v3612_v8, %v3612_v8  ;;  %v2044_v12 = vmul.f32 0.03125, %v2032_v10  ;;  %v1768_v22 = vmul.f32 %v1757_v13, %v1744_v15  ;;  %v2056_v14 = vsub.f32 %v3575_v20, %v3612_v8  ;;  %v2952_v20 = vld [vmem:[%s3812_s11 + $0xe0] sm:$0xff] }
 0x93e   : > { %v1761_v6 = vmul.f32 0.5, %v1760_v9 }
 0x93f   : > { %v2052_v16 = vsub.f32 %v2044_v12, %v2048_v11  ;;  %v1771_v35 = vmul.f32 %v3000_v21, %v1768_v22  ;;  %v3003_v11 = vld [vmem:[%s3815_s14 + $0x4] ss:$0 sm:$0xff] }
 0x940   : > { %v1762_v17 = vsub.f32 1.5, %v1761_v6  ;;  %1886 = vmatpush.bf16.msrb.mxu1 %v2952_v20 }
 0x941   : > { %v3041_v18 = vpop.eup %3040  ;;  %v2060_v23 = vadd.f32 1e-05, %v2052_v16  ;;  %v3628_v30 = vadd.f32 %v3002_v39, %v1771_v35 }
 0x942   : > { %v1763_v24 = vmul.f32 %v3039_v1, %v1762_v17  ;;  %v2064_v25 = vmul.f32 %v3041_v18, %v2059_v2  ;;  %v2019_v27 = vpop.xlane.xlu2 %2018  ;;  %vm2070_vm14 = vweird.f32 %v3041_v18 }
 0x943   : > { %3042 = vrsqrt.f32 %v2060_v23  ;;  %v3621_v31 = vmul.f32 0.03125, %v2019_v27  ;;  %vm2071_vm2 = vmor %vm2069_vm15, %vm2070_vm14  ;;  %vm2079_vm4 = vweird.f32 %v2060_v23 }
 0x944   : > { %v1767_v0 = vsel %vm1766_vm13, %v3039_v1, %v1763_v24  ;;  %v2065_v32 = vmul.f32 %v3041_v18, %v2064_v25  ;;  %v2035_v34 = vpop.xlane.xlu1 %2034 }
 0x945   : > { %v1769_v40 = vmul.f32 %v1767_v0, %v1745_v28  ;;  %v2049_v36 = vmul.f32 %v3621_v31, %v3621_v31  ;;  %v2045_v37 = vmul.f32 0.03125, %v2035_v34  ;;  %v2057_v25 = vsub.f32 %v3582_v26, %v3621_v31  ;;  %v2951_v31 = vld [vmem:[%s3812_s11 + $0xd8] sm:$0xff] }
 0x946   : > { %v2066_v38 = vmul.f32 0.5, %v2065_v32  ;;  %1887 = vmatpush.bf16.msrb.mxu1 %v2951_v31 }
 0x947   : > { %v1772_v41 = vmul.f32 %v3000_v21, %v1769_v40  ;;  %v2053_v7 = vsub.f32 %v2045_v37, %v2049_v36 }
 0x948   : > { %v2067_v42 = vsub.f32 1.5, %v2066_v38  ;;  %v2950_v38 = vld [vmem:[%s3812_s11 + $0xd0] sm:$0xff] }
 0x949   : > { %v3043_v43 = vpop.eup %3042  ;;  %v2061_v44 = vadd.f32 1e-05, %v2053_v7  ;;  %v3630_v45 = vadd.f32 %v3002_v39, %v1772_v41  ;;  %v2966_v41 = vld [vmem:[%s3812_s11 + $0x130] sm:$0xff]  ;;  %v2949_v7 = vld [vmem:[%s3812_s11 + $0xc8] sm:$0xff] }
 0x94a   : > { %v2068_v46 = vmul.f32 %v3041_v18, %v2067_v42  ;;  %v2074_v47 = vmul.f32 %v3043_v43, %v2060_v23  ;;  %v2022_v48 = vpop.xlane.xlu0 %2021  ;;  %vm2080_vm3 = vweird.f32 %v3043_v43  ;;  %1888 = vmatpush.bf16.msrb.mxu1 %v2950_v38  ;;  %v2965_v42 = vld [vmem:[%s3812_s11 + $0x128] sm:$0xff] }
 0x94b   : > { %3044 = vrsqrt.f32 %v2061_v44  ;;  %v3632_v49 = vmul.f32 0.03125, %v2022_v48  ;;  %v1776_v50 = vpack.c.bf16 %v3630_v45, %v3628_v30  ;;  %vm2081_vm5 = vmor %vm2079_vm4, %vm2080_vm3  ;;  %vm2089_vm6 = vweird.f32 %v2061_v44  ;;  %v2961_v48 = vld [vmem:[%s3812_s11 + $0x108] sm:$0xff] }
 0x94c   : > { %v2075_v51 = vmul.f32 %v3043_v43, %v2074_v47  ;;  %v2038_v52 = vpop.xlane.xlu2 %2037  ;;  %v2072_v57 = vsel %vm2071_vm2, %v3041_v18, %v2068_v46  ;;  %v2963_v46 = vld [vmem:[%s3812_s11 + $0x118] sm:$0xff]  ;;  %v2962_v47 = vld [vmem:[%s3812_s11 + $0x110] sm:$0xff] }
 0x94d   : > { %v2050_v53 = vmul.f32 %v3632_v49, %v3632_v49  ;;  %v2046_v54 = vmul.f32 0.03125, %v2038_v52  ;;  %2757 = vmatmul.msk.bf16.vlgmr.msra.gmra.mxu0 %vm739_vm1, %v1776_v50  ;;  %v2103_v63 = vmul.f32 %v2072_v57, %v2055_v58  ;;  %v2058_v32 = vsub.f32 %v3589_v19, %v3632_v49  ;;  %v2967_v19 = vld [vmem:[%s3812_s11 + $0x138] sm:$0xff]  ;;  %v2960_v49 = vld [vmem:[%s3812_s11 + $0x100] sm:$0xff] }
 0x94e   : > { %v2076_v33 = vmul.f32 0.5, %v2075_v51  ;;  %2236 = vmatpush.bf16.msrb.mxu2 %v2967_v19  ;;  %1889 = vmatpush.bf16.msrb.mxu1 %v2949_v7  ;;  %v3004_v51 = vld [vmem:[%s3811_s10 + $0x3] ss:$0 sm:$0xff] }
 0x94f   : > { %v2054_v59 = vsub.f32 %v2046_v54, %v2050_v53  ;;  %v2108_v9 = vmul.f32 %v3001_v62, %v2103_v63 }
 0x950   : > { %v2077_v60 = vsub.f32 1.5, %v2076_v33 }
 0x951   : > { %v3045_v61 = vpop.eup %3044  ;;  %v2062_v1 = vadd.f32 1e-05, %v2054_v59  ;;  %v2113_v15 = vadd.f32 %v3003_v11, %v2108_v9  ;;  %v3005_v59 = vld [vmem:[%s3811_s10 + $0x4] ss:$0 sm:$0xff] }
 0x952   : > { %v2078_v2 = vmul.f32 %v3043_v43, %v2077_v60  ;;  %v2084_v3 = vmul.f32 %v3045_v61, %v2061_v44  ;;  %vm2090_vm0 = vweird.f32 %v3045_v61  ;;  %2237 = vmatpush.bf16.msrb.mxu2 %v2966_v41  ;;  %v2964_v44 = vld [vmem:[%s3812_s11 + $0x120] sm:$0xff] }
 0x953   : > { %3046 = vrsqrt.f32 %v2062_v1  ;;  %vm2091_vm7 = vmor %vm2089_vm6, %vm2090_vm0  ;;  %vm2099_vm9 = vweird.f32 %v2062_v1 }
 0x954   : > { %v2082_v4 = vsel %vm2081_vm5, %v3043_v43, %v2078_v2  ;;  %v2085_v5 = vmul.f32 %v3045_v61, %v2084_v3  ;;  %v2948_v43 = vld [vmem:[%s3812_s11 + $0xc0] sm:$0xff] }
 0x955   : > { %v2104_v10 = vmul.f32 %v2082_v4, %v2056_v14  ;;  %1890 = vmatpush.bf16.msrb.mxu1 %v2948_v43 }
 0x956   : > { %v2086_v12 = vmul.f32 0.5, %v2085_v5  ;;  %2238 = vmatpush.bf16.msrb.mxu2 %v2965_v42 }
 0x957   : > { %v2109_v13 = vmul.f32 %v3001_v62, %v2104_v10  ;;  %v3006_v10 = vld [vmem:[%s3813_s12 + $0x3] ss:$0 sm:$0xff] }
 0x958   : > { %v2087_v8 = vsub.f32 1.5, %v2086_v12 }
 0x959   : > { %v3047_v6 = vpop.eup %3046  ;;  %v2114_v16 = vadd.f32 %v3003_v11, %v2109_v13 }
 0x95a   : > { %v2088_v17 = vmul.f32 %v3045_v61, %v2087_v8  ;;  %v2094_v18 = vmul.f32 %v3047_v6, %v2062_v1  ;;  %vm2100_vm8 = vweird.f32 %v3047_v6  ;;  %2239 = vmatpush.bf16.msrb.mxu2 %v2964_v44 }
 0x95b   : > { %v2117_v21 = vpack.c.bf16 %v2114_v16, %v2113_v15  ;;  %vm2101_vm10 = vmor %vm2099_vm9, %vm2100_vm8  ;;  %vm2329_vm8 = vcmask 0  }
 0x95c   : > { %v2095_v22 = vmul.f32 %v3047_v6, %v2094_v18  ;;  %v2092_v23 = vsel %vm2091_vm7, %v3045_v61, %v2088_v17 }
 0x95d   : > { %2832 = vmatmul.msk.bf16.vlgmr.msrb.gmra.mxu0 %vm739_vm1, %v2117_v21  ;;  %v2105_v28 = vmul.f32 %v2092_v23, %v2057_v25 }
 0x95e   : > { %v2096_v24 = vmul.f32 0.5, %v2095_v22  ;;  %2240 = vmatpush.bf16.msrb.mxu2 %v2963_v46  ;;  %v3007_v22 = vld [vmem:[%s3813_s12 + $0x4] ss:$0 sm:$0xff] }
 0x95f   : > { %v2110_v40 = vmul.f32 %v3001_v62, %v2105_v28 }
 0x960   : > { %v2097_v27 = vsub.f32 1.5, %v2096_v24 }
 0x961   : > { %v3666_v37 = vadd.f32 %v3003_v11, %v2110_v40 }
 0x962   : > { %v2098_v0 = vmul.f32 %v3047_v6, %v2097_v27  ;;  %2241 = vmatpush.bf16.msrb.mxu2 %v2962_v47 }
 0x964   : > { %v2102_v34 = vsel %vm2101_vm10, %v3047_v6, %v2098_v0 }
 0x965   : > { %v2106_v35 = vmul.f32 %v2102_v34, %v2058_v32 }
 0x966   : > { %2242 = vmatpush.bf16.msrb.mxu2 %v2961_v48 }
 0x967   : > { %v2111_v36 = vmul.f32 %v3001_v62, %v2106_v35 }
 0x969   : > { %v3668_v39 = vadd.f32 %v3003_v11, %v2111_v36 }
 0x96a   : > { %2243 = vmatpush.bf16.msrb.mxu2 %v2960_v49 }
 0x96b   : > { %v2118_v26 = vpack.c.bf16 %v3668_v39, %v3666_v37 }
 0x96d   : > { %2833 = vmatmul.msk.bf16.gmra.mxu0 %vm739_vm1, %v2118_v26 }
 0x9ca   : > { %v1808_v50 = vpop.f32.mrf.mxu0 }
 0x9cb   : > { %v1809_v52 = vadd.f32 %v3004_v51, %v1808_v50 }
 0x9cd   : > { %v1813_v55 = vmax.f32 %v1809_v52, 0.0 }
 0x9d2   : > { %v1810_v53 = vpop.f32.mrf.mxu0 }
 0x9d3   : > { %v1811_v54 = vadd.f32 %v3004_v51, %v1810_v53 }
 0x9d5   : > { %v1814_v57 = vmax.f32 %v1811_v54, 0.0 }
 0x9d7   : > { %v1815_v33 = vpack.c.bf16 %v1814_v57, %v1813_v55 }
 0x9d9   : > { %1891 = vmatmul.bf16.vlgmr.msrb.gmra.mxu1 %v1815_v33 }
 0x9da   : > { %v2153_v58 = vpop.f32.mrf.mxu0 }
 0x9db   : > { %v2154_v29 = vadd.f32 %v3005_v59, %v2153_v58 }
 0x9dd   : > { %v2163_v62 = vmax.f32 %v2154_v29, 0.0 }
 0x9e2   : > { %v2155_v60 = vpop.f32.mrf.mxu0 }
 0x9e3   : > { %v2156_v61 = vadd.f32 %v3005_v59, %v2155_v60 }
 0x9e5   : > { %v2164_v63 = vmax.f32 %v2156_v61, 0.0 }
 0x9e7   : > { %v2167_v1 = vpack.c.bf16 %v2164_v63, %v2163_v62 }
 0x9e9   : > { %2244 = vmatmul.bf16.vlgmr.msrb.gmra.mxu2 %v2167_v1 }
 0x9ea   : > { %v2158_v2 = vpop.f32.mrf.mxu0 }
 0x9eb   : > { %v2159_v3 = vadd.f32 %v3005_v59, %v2158_v2 }
 0x9ed   : > { %v2165_v4 = vmax.f32 %v2159_v3, 0.0 }
 0x9f2   : > { %v2160_v14 = vpop.f32.mrf.mxu0 }
 0x9f3   : > { %v2161_v56 = vadd.f32 %v3005_v59, %v2160_v14 }
 0x9f5   : > { %v2166_v5 = vmax.f32 %v2161_v56, 0.0 }
 0x9f7   : > { %v2168_v9 = vpack.c.bf16 %v2166_v5, %v2165_v4 }
 0x9f9   : > { %2247 = vmatmul.bf16.gmra.mxu2 %v2168_v9 }
 0xa56   : > { %v1892_v11 = vpop.f32.mrf.mxu1 }
 0xa57   : > { %v1893_v12 = vadd.f32 %v3006_v10, %v1892_v11 }
 0xa59   : > { %v3719_v13 = vadd.f32 %v1893_v12, %v3628_v30 }
 0xa5b   : > { %v1901_v20 = vsel %vm739_vm1, %v3719_v13, 0.0  ;;  %v1907_v8 = vmul.f32 %v3719_v13, %v3719_v13 }
 0xa5c   : > { %1902 = vadd.xlane.f32.xlu0 %v1901_v20 }
 0xa5d   : > { %v1909_v6 = vsel %vm739_vm1, %v1907_v8, 0.0 }
 0xa5e   : > { %v1894_v15 = vpop.f32.mrf.mxu1  ;;  %1910 = vadd.xlane.f32.xlu1 %v1909_v6 }
 0xa5f   : > { %v1895_v16 = vadd.f32 %v3006_v10, %v1894_v15 }
 0xa61   : > { %v3727_v17 = vadd.f32 %v1895_v16, %v3630_v45 }
 0xa63   : > { %v1904_v18 = vsel %vm739_vm1, %v3727_v17, 0.0  ;;  %v1908_v0 = vmul.f32 %v3727_v17, %v3727_v17 }
 0xa65   : > { %v1912_v35 = vsel %vm739_vm1, %v1908_v0, 0.0 }
 0xa66   : > { %1905 = vadd.xlane.f32.xlu1 %v1904_v18 }
 0xa6c   : > { %v2245_v30 = vpop.f32.mrf.mxu2 }
 0xa74   : > { %v2246_v21 = vpop.f32.mrf.mxu2 }
 0xa7c   : > { %v2248_v23 = vpop.f32.mrf.mxu2 }
 0xa7d   : > { %v2249_v24 = vadd.f32 %v3007_v22, %v2248_v23 }
 0xa7f   : > { %v3735_v25 = vadd.f32 %v2249_v24, %v3666_v37 }
 0xa81   : > { %v2257_v27 = vsel %vm739_vm1, %v3735_v25, 0.0  ;;  %v2263_v37 = vmul.f32 %v3735_v25, %v3735_v25 }
 0xa82   : > { %2258 = vadd.xlane.f32.xlu2 %v2257_v27 }
 0xa83   : > { %v2265_v26 = vsel %vm739_vm1, %v2263_v37, 0.0 }
 0xa84   : > { %v2250_v45 = vpop.f32.mrf.mxu2 }
 0xa85   : > { %v2251_v28 = vadd.f32 %v3007_v22, %v2250_v45 }
 0xa87   : > { %v3742_v32 = vadd.f32 %v2251_v28, %v3668_v39 }
 0xa89   : > { %v2260_v34 = vsel %vm739_vm1, %v3742_v32, 0.0  ;;  %v2264_v40 = vmul.f32 %v3742_v32, %v3742_v32 }
 0xa8a   : > { %2261 = vadd.xlane.f32.xlu0 %v2260_v34  ;;  %1913 = vadd.xlane.f32.xlu2 %v1912_v35  ;;  %v3008_v34 = vld [vmem:[%s3816_s15 + $0x3] ss:$0 sm:$0xff] }
 0xa8b   : > { %v2268_v36 = vsel %vm739_vm1, %v2264_v40, 0.0 }
 0xa8c   : > { %2269 = vadd.xlane.f32.xlu1 %v2268_v36 }
 0xa92   : > { %2266 = vadd.xlane.f32.xlu0 %v2265_v26 }
 0xacf   : > { %v1903_v39 = vpop.xlane.xlu0 %1902 }
 0xad0   : > { %v3753_v31 = vmul.f32 0.03125, %v1903_v39  ;;  %v3011_v39 = vld [vmem:[%s3817_s16 + $0x4] ss:$0 sm:$0xff] }
 0xad1   : > { %v1911_v19 = vpop.xlane.xlu1 %1910 }
 0xad2   : > { %v1919_v38 = vmul.f32 %v3753_v31, %v3753_v31  ;;  %v1917_v41 = vmul.f32 0.03125, %v1911_v19  ;;  %v1923_v37 = vsub.f32 %v3719_v13, %v3753_v31 }
 0xad4   : > { %v1921_v7 = vsub.f32 %v1917_v41, %v1919_v38  ;;  %v3009_v38 = vld [vmem:[%s3817_s16 + $0x3] ss:$0 sm:$0xff] }
 0xad6   : > { %v1925_v42 = vadd.f32 1e-05, %v1921_v7 }
 0xad8   : > { %3048 = vrsqrt.f32 %v1925_v42  ;;  %vm1933_vm15 = vweird.f32 %v1925_v42 }
 0xad9   : > { %v1906_v44 = vpop.xlane.xlu1 %1905 }
 0xada   : > { %v1916_v46 = vmul.f32 0.03125, %v1906_v44 }
 0xadc   : > { %v1920_v49 = vmul.f32 %v1916_v46, %v1916_v46  ;;  %v1924_v22 = vsub.f32 %v3727_v17, %v1916_v46  ;;  %v3010_v17 = vld [vmem:[%s3816_s15 + $0x4] ss:$0 sm:$0xff] }
 0xade   : > { %v3757_v52 = vpop.eup %3048 }
 0xadf   : > { %v1928_v33 = vmul.f32 %v3757_v52, %v1925_v42  ;;  %vm1934_vm12 = vweird.f32 %v3757_v52 }
 0xae0   : > { %vm3768_vm3 = vmor %vm1933_vm15, %vm1934_vm12 }
 0xae1   : > { %v1929_v62 = vmul.f32 %v3757_v52, %v1928_v33 }
 0xae3   : > { %v1930_v14 = vmul.f32 0.5, %v1929_v62 }
 0xae5   : > { %v1931_v11 = vsub.f32 1.5, %v1930_v14 }
 0xae7   : > { %v1932_v16 = vmul.f32 %v3757_v52, %v1931_v11 }
 0xae9   : > { %v1936_v36 = vsel %vm3768_vm3, %v3757_v52, %v1932_v16 }
 0xaea   : > { %v1947_v7 = vmul.f32 %v1936_v36, %v1923_v37 }
 0xaf5   : > { %v2259_v43 = vpop.xlane.xlu2 %2258 }
 0xaf6   : > { %v3760_v58 = vmul.f32 0.03125, %v2259_v43 }
 0xaf8   : > { %v2275_v63 = vmul.f32 %v3760_v58, %v3760_v58  ;;  %v2279_v43 = vsub.f32 %v3735_v25, %v3760_v58 }
 0xafd   : > { %v2262_v47 = vpop.xlane.xlu0 %2261  ;;  %v1914_v48 = vpop.xlane.xlu2 %1913 }
 0xafe   : > { %v2272_v50 = vmul.f32 0.03125, %v2262_v47  ;;  %v1918_v51 = vmul.f32 0.03125, %v1914_v48  ;;  %v1950_v47 = vmul.f32 %v3008_v34, %v1947_v7 }
 0xaff   : > { %v2270_v53 = vpop.xlane.xlu1 %2269 }
 0xb00   : > { %v2276_v54 = vmul.f32 %v2272_v50, %v2272_v50  ;;  %v1922_v55 = vsub.f32 %v1918_v51, %v1920_v49  ;;  %v2274_v57 = vmul.f32 0.03125, %v2270_v53  ;;  %v2280_v28 = vsub.f32 %v3742_v32, %v2272_v50 }
 0xb01   : > { %v1953_v52 = vadd.f32 %v3009_v38, %v1950_v47 }
 0xb02   : > { %v1926_v59 = vadd.f32 1e-05, %v1922_v55  ;;  %v2278_v29 = vsub.f32 %v2274_v57, %v2276_v54 }
 0xb04   : > { %3050 = vrsqrt.f32 %v1926_v59  ;;  %v2282_v60 = vadd.f32 1e-05, %v2278_v29  ;;  %vm1943_vm13 = vweird.f32 %v1926_v59 }
 0xb05   : > { %v2267_v61 = vpop.xlane.xlu0 %2266 }
 0xb06   : > { %3052 = vrsqrt.f32 %v2282_v60  ;;  %v2273_v1 = vmul.f32 0.03125, %v2267_v61  ;;  %vm2299_vm4 = vweird.f32 %v2282_v60 }
 0xb08   : > { %v2277_v2 = vsub.f32 %v2273_v1, %v2275_v63 }
 0xb0a   : > { %v3051_v3 = vpop.eup %3050  ;;  %v2281_v56 = vadd.f32 1e-05, %v2277_v2 }
 0xb0b   : > { %v1938_v4 = vmul.f32 %v3051_v3, %v1926_v59  ;;  %vm1944_vm11 = vweird.f32 %v3051_v3 }
 0xb0c   : > { %v3053_v5 = vpop.eup %3052  ;;  %3054 = vrsqrt.f32 %v2281_v56  ;;  %vm1945_vm2 = vmor %vm1943_vm13, %vm1944_vm11  ;;  %vm2289_vm6 = vweird.f32 %v2281_v56 }
 0xb0d   : > { %v1939_v9 = vmul.f32 %v3051_v3, %v1938_v4  ;;  %v2294_v10 = vmul.f32 %v3053_v5, %v2282_v60  ;;  %vm2300_vm14 = vweird.f32 %v3053_v5 }
 0xb0e   : > { %vm2301_vm5 = vmor %vm2299_vm4, %vm2300_vm14 }
 0xb0f   : > { %v1940_v12 = vmul.f32 0.5, %v1939_v9  ;;  %v2295_v20 = vmul.f32 %v3053_v5, %v2294_v10 }
 0xb11   : > { %v1941_v8 = vsub.f32 1.5, %v1940_v12  ;;  %v2296_v6 = vmul.f32 0.5, %v2295_v20 }
 0xb12   : > { %v3055_v15 = vpop.eup %3054 }
 0xb13   : > { %v1942_v18 = vmul.f32 %v3051_v3, %v1941_v8  ;;  %v2297_v30 = vsub.f32 1.5, %v2296_v6  ;;  %v2284_v21 = vmul.f32 %v3055_v15, %v2281_v56  ;;  %vm2290_vm0 = vweird.f32 %v3055_v15 }
 0xb14   : > { %vm2291_vm7 = vmor %vm2289_vm6, %vm2290_vm0 }
 0xb15   : > { %v2298_v24 = vmul.f32 %v3053_v5, %v2297_v30  ;;  %v2285_v27 = vmul.f32 %v3055_v15, %v2284_v21  ;;  %v1946_v45 = vsel %vm1945_vm2, %v3051_v3, %v1942_v18 }
 0xb16   : > { %v1948_v0 = vmul.f32 %v1946_v45, %v1924_v22 }
 0xb17   : > { %v2286_v35 = vmul.f32 0.5, %v2285_v27  ;;  %v2302_v40 = vsel %vm2301_vm5, %v3053_v5, %v2298_v24 }
 0xb18   : > { %v1951_v32 = vmul.f32 %v3008_v34, %v1948_v0  ;;  %v2304_v26 = vmul.f32 %v2302_v40, %v2280_v28 }
 0xb19   : > { %v2287_v19 = vsub.f32 1.5, %v2286_v35 }
 0xb1a   : > { %v2307_v41 = vmul.f32 %v3010_v17, %v2304_v26  ;;  %v1954_v13 = vadd.f32 %v3009_v38, %v1951_v32 }
 0xb1b   : > { %v2288_v42 = vmul.f32 %v3055_v15, %v2287_v19 }
 0xb1c   : > { %v2310_v31 = vadd.f32 %v3011_v39, %v2307_v41 }
 0xb1d   : > { %v2292_v44 = vsel %vm2291_vm7, %v3055_v15, %v2288_v42 }
 0xb1e   : > { %v2312_v46 = vsub.f32 %v2310_v31, %v1954_v13  ;;  %v2303_v48 = vmul.f32 %v2292_v44, %v2279_v43 }
 0xb20   : > { %v2314_v49 = vmul.f32 %v2312_v46, %v2312_v46  ;;  %v2306_v50 = vmul.f32 %v3010_v17, %v2303_v48 }
 0xb22   : > { %v2318_v51 = vsel %vm739_vm1, %v2314_v49, 0.0  ;;  %v2309_v53 = vadd.f32 %v3011_v39, %v2306_v50 }
 0xb23   : > { %2319 = vadd.xlane.f32.xlu0 %v2318_v51 }
 0xb24   : > { %v2311_v54 = vsub.f32 %v2309_v53, %v1953_v52 }
 0xb26   : > { %v2313_v55 = vmul.f32 %v2311_v54, %v2311_v54 }
 0xb28   : > { %v2315_v57 = vsel %vm739_vm1, %v2313_v55, 0.0 }
 0xb29   : > { %2316 = vadd.xlane.f32.xlu2 %v2315_v57 }
 0xb96   : > { %v2320_v25 = vpop.xlane.xlu0 %2319 }
 0xb9c   : > { %v2317_v33 = vpop.xlane.xlu2 %2316 }
 0xb9d   : > { %v2321_v58 = vadd.f32 %v2320_v25, %v2317_v33 }
 0xb9f   : > { %v2322_v59 = vrot.slane %v2321_v58, 4 }
 0xba1   : > { %v2323_v29 = vadd.f32 %v2322_v59, %v2321_v58 }
 0xba3   : > { %v2324_v60 = vrot.slane %v2323_v29, 2 }
 0xba5   : > { %v2325_v61 = vadd.f32 %v2324_v60, %v2323_v29 }
 0xba7   : > { %v2326_v62 = vrot.slane %v2325_v61, 1 }
 0xba9   : > { %v2327_v63 = vadd.f32 %v2326_v62, %v2325_v61 }
 0xbab   : > { %v2328_v1 = vmul.f32 0.001953125, %v2327_v63 }
 0xbad   : > { %2330 = vst.msk [vmem:[%s575_s26] sm:$0x1] %vm2329_vm8, %v2328_v1 }
 0xbae PF: > { %s27_s24 = sadd.s32 1, %s3062_s24  }
 0xbaf   : > { %p24_p4 = scmp.ge.s32.totalorder %s27_s24, 10  }
 0xbb1   :  { %26 = sbr.rel (!%p24_p4) target bundleno = 3 (0x3), region = 138 }

</bundles_post_ra>
